<compile_context>
chip_gen: v5e
topology: v5e:2x2
jax: 0.10.0
libtpu: 0.0.40
codegen_flags: <defaults>
</compile_context>

<pallas_src>
import jax
import jax.numpy as jnp
from jax.experimental import pallas as pl
from jax.experimental.pallas import tpu as pltpu


def _round_up(x, m):
    return ((x + m - 1) // m) * m


def dsir2_kernel(x_ref, wbuf_ref, w2_ref, o_ref):
    """grid = (batch tile b ["parallel"], expansion tile e ["arbitrary"]).

    x_ref   : (tile_b, D)        resident across e
    wbuf_ref: (D, tile_e)        streamed along e
    w2_ref  : (2, tile_e, Kp)    [W_main_tile, C*W_comp_tile], streamed along e
    o_ref   : (tile_b, Kp)       accumulator, resident across e
    """
    e = pl.program_id(1)

    @pl.when(e == 0)
    def _init():
        o_ref[...] = jnp.zeros_like(o_ref)

    # Random-buffer expansion (Identity activation in the module) -> MXU.
    h = jnp.dot(x_ref[...], wbuf_ref[...], preferred_element_type=jnp.float32)

    # Dual-stream contraction: relu on VPU, tanh on EUP (separate slots), the
    # two tiny-K matmuls read static slices of the stacked weight block.
    main = jnp.dot(jnp.maximum(h, 0.0), w2_ref[0],
                   preferred_element_type=jnp.float32)
    comp = jnp.dot(jnp.tanh(h), w2_ref[1],
                   preferred_element_type=jnp.float32)
    o_ref[...] += main + comp


def dsir2_forward(x_nchw, w_buf, w_main, w_comp, *, c_mix=1.0,
                  tile_b=128, tile_e=512, compute_dtype=jnp.float32):
    """Wrapper: flatten (backbone), pad/tile to TPU-friendly shapes, launch kernel."""
    B = x_nchw.shape[0]
    x_flat = x_nchw.reshape(B, -1).astype(jnp.float32)   # backbone = Flatten
    D = x_flat.shape[1]
    E = w_buf.shape[1]
    K = w_main.shape[1]

    # ---- tile sizing / padding (all padding is exact: zeros contribute 0) ----
    tile_b = min(tile_b, _round_up(B, 8))        # sublane-aligned batch tile
    Bp = _round_up(B, tile_b)
    tile_e = min(tile_e, _round_up(E, 256))      # MXU-aligned (v6e/v7x 256-wide)
    Ep = _round_up(E, tile_e)
    Kp = _round_up(K, 128)                       # lane-dense output stores

    x_p = jnp.pad(x_flat, ((0, Bp - B), (0, 0)))
    wbuf_p = jnp.pad(w_buf.astype(jnp.float32), ((0, 0), (0, Ep - E)))
    wmain_p = jnp.pad(w_main.astype(jnp.float32), ((0, Ep - E), (0, Kp - K)))
    wcomp_p = jnp.pad(w_comp.astype(jnp.float32), ((0, Ep - E), (0, Kp - K)))

    # Stack second-stage weights and fold C into the comp stream once.
    # Shape (2, Ep, Kp); the kernel block picks (2, tile_e, Kp) per e-tile.
    w2 = jnp.stack([wmain_p, jnp.float32(c_mix) * wcomp_p], axis=0)

    # Optional bf16 streaming of the dominant HBM traffic (X, W_buf); the
    # matmuls still accumulate in f32 via preferred_element_type.
    if compute_dtype != jnp.float32:
        x_p = x_p.astype(compute_dtype)
        wbuf_p = wbuf_p.astype(compute_dtype)

    grid = (Bp // tile_b, Ep // tile_e)

    out = pl.pallas_call(
        dsir2_kernel,
        out_shape=jax.ShapeDtypeStruct((Bp, Kp), jnp.float32),
        grid_spec=pltpu.PrefetchScalarGridSpec(
            num_scalar_prefetch=0,
            grid=grid,
            in_specs=[
                pl.BlockSpec((tile_b, D), lambda b, e: (b, 0)),       # X tile (resident across e)
                pl.BlockSpec((D, tile_e), lambda b, e: (0, e)),       # W_buf tile (streamed)
                pl.BlockSpec((2, tile_e, Kp), lambda b, e: (0, e, 0)),  # [W_main; C*W_comp] tile
            ],
            out_specs=pl.BlockSpec((tile_b, Kp), lambda b, e: (b, 0)),  # accumulator output
        ),
        compiler_params=pltpu.CompilerParams(
            dimension_semantics=("parallel", "arbitrary"),
        ),
    )(x_p, wbuf_p, w2)

    return out[:B, :K]


def dsir2_reference(x_nchw, w_buf, w_main, w_comp, *, c_mix=1.0):
    """Pure-JAX reference for correctness checking."""
    x = x_nchw.reshape(x_nchw.shape[0], -1)
    h = x @ w_buf
    return jnp.maximum(h, 0.0) @ w_main + c_mix * (jnp.tanh(h) @ w_comp)


if __name__ == "__main__":
    # Small, deterministic configuration (module defaults scaled down):
    #   backbone_output = C*H*W = 4*16*16 = 1024
    #   expansion_size  = 1024   (module default 8192, shrunk for the test)
    #   num_classes     = 16
    B, C, H, W = 2, 4, 16, 16
    D = C * H * W
    E = 1024
    K = 16
    C_MIX = 0.5   # non-trivial C to exercise the folded-weight path

    key = jax.random.PRNGKey(0)
    kx, kb, km, kc = jax.random.split(key, 4)

    x = jax.random.normal(kx, (B, C, H, W), dtype=jnp.float32)
    # RandomBuffer weight (frozen random projection) + the two analytic linear
    # weights — deterministically initialized in-script.
    w_buf = jax.random.normal(kb, (D, E), dtype=jnp.float32) / jnp.sqrt(D)
    w_main = jax.random.normal(km, (E, K), dtype=jnp.float32) / jnp.sqrt(E)
    w_comp = jax.random.normal(kc, (E, K), dtype=jnp.float32) / jnp.sqrt(E)

    out = dsir2_forward(x, w_buf, w_main, w_comp, c_mix=C_MIX,
                        tile_b=128, tile_e=512)
    out = jax.block_until_ready(out)

    ref = dsir2_reference(x, w_buf, w_main, w_comp, c_mix=C_MIX)
    assert out.shape == (B, K)
    assert jnp.allclose(out, ref, atol=2e-3, rtol=2e-3), "mismatch vs reference"

    print("KERNEL_OK")
</pallas_src>

<mosaic_0001>
module attributes {stable_mosaic.version = 11 : i64} {
  func.func @dsir2_kernel(%arg0: i32, %arg1: i32, %arg2: memref<8x1024xf32, #tpu.memory_space<vmem>>, %arg3: memref<1024x512xf32, #tpu.memory_space<vmem>>, %arg4: memref<2x512x128xf32, #tpu.memory_space<vmem>>, %arg5: memref<8x128xf32, #tpu.memory_space<vmem>>) attributes {dimension_semantics = [#tpu.dimension_semantics<parallel>, #tpu.dimension_semantics<arbitrary>], iteration_bounds = array<i64: 1, 2>, scalar_prefetch = 0 : i64, scratch_operands = 0 : i64, tpu.core_type = #tpu.core_type<tc>, window_params = [{transform_indices = @transform_0, window_bounds = array<i64: 8, 1024>}, {transform_indices = @transform_1, window_bounds = array<i64: 1024, 512>}, {transform_indices = @transform_2, window_bounds = array<i64: 2, 512, 128>}, {transform_indices = @transform_3, window_bounds = array<i64: 8, 128>}]} {
    %c0_i32 = arith.constant 0 : i32
    %0 = arith.cmpi eq, %arg1, %c0_i32 : i32
    %1 = arith.extui %0 : i1 to i32
    %c0_i32_0 = arith.constant 0 : i32
    %2 = arith.cmpi ne, %1, %c0_i32_0 : i32
    scf.if %2 {
      %cst_16 = arith.constant 0.000000e+00 : f32
      %19 = vector.broadcast %cst_16 : f32 to vector<8x128xf32>
      %c0_17 = arith.constant 0 : index
      %c0_18 = arith.constant 0 : index
      %20 = vector.load %arg5[%c0_17, %c0_18] : memref<8x128xf32, #tpu.memory_space<vmem>>, vector<8x128xf32>
      tpu.vector_store %arg5[%c0_17, %c0_18], %19 {strides = array<i32>} : memref<8x128xf32, #tpu.memory_space<vmem>>, vector<8x128xf32>,
    } else {
    }
    %c0 = arith.constant 0 : index
    %c0_1 = arith.constant 0 : index
    %3 = vector.load %arg2[%c0, %c0_1] : memref<8x1024xf32, #tpu.memory_space<vmem>>, vector<8x1024xf32>
    %c0_2 = arith.constant 0 : index
    %c0_3 = arith.constant 0 : index
    %4 = vector.load %arg3[%c0_2, %c0_3] : memref<1024x512xf32, #tpu.memory_space<vmem>>, vector<1024x512xf32>
    %cst = arith.constant dense<0.000000e+00> : vector<8x512xf32>
    %5 = tpu.matmul %3, %4, %cst {dimension_numbers = #tpu.dot_dimension_numbers<[1], [0], [0], [1], [0, 0, 1, 1], [], []>} : vector<8x1024xf32>, vector<1024x512xf32>, vector<8x512xf32> -> vector<8x512xf32>
    %cst_4 = arith.constant 0.000000e+00 : f32
    %6 = vector.broadcast %cst_4 : f32 to vector<8x512xf32>
    %7 = arith.maximumf %5, %6 : vector<8x512xf32>
    %c0_5 = arith.constant 0 : index
    %c0_6 = arith.constant 0 : index
    %c0_7 = arith.constant 0 : index
    %8 = vector.load %arg4[%c0_5, %c0_6, %c0_7] : memref<2x512x128xf32, #tpu.memory_space<vmem>>, vector<1x512x128xf32>
    %9 = vector.shape_cast %8 : vector<1x512x128xf32> to vector<512x128xf32>
    %cst_8 = arith.constant dense<0.000000e+00> : vector<8x128xf32>
    %10 = tpu.matmul %7, %9, %cst_8 {dimension_numbers = #tpu.dot_dimension_numbers<[1], [0], [0], [1], [0, 0, 1, 1], [], []>} : vector<8x512xf32>, vector<512x128xf32>, vector<8x128xf32> -> vector<8x128xf32>
    %11 = math.tanh %5 : vector<8x512xf32>
    %c1 = arith.constant 1 : index
    %c0_9 = arith.constant 0 : index
    %c0_10 = arith.constant 0 : index
    %12 = vector.load %arg4[%c1, %c0_9, %c0_10] : memref<2x512x128xf32, #tpu.memory_space<vmem>>, vector<1x512x128xf32>
    %13 = vector.shape_cast %12 : vector<1x512x128xf32> to vector<512x128xf32>
    %cst_11 = arith.constant dense<0.000000e+00> : vector<8x128xf32>
    %14 = tpu.matmul %11, %13, %cst_11 {dimension_numbers = #tpu.dot_dimension_numbers<[1], [0], [0], [1], [0, 0, 1, 1], [], []>} : vector<8x512xf32>, vector<512x128xf32>, vector<8x128xf32> -> vector<8x128xf32>
    %c0_12 = arith.constant 0 : index
    %c0_13 = arith.constant 0 : index
    %15 = vector.load %arg5[%c0_12, %c0_13] : memref<8x128xf32, #tpu.memory_space<vmem>>, vector<8x128xf32>
    %16 = arith.addf %10, %14 : vector<8x128xf32>
    %17 = arith.addf %15, %16 : vector<8x128xf32>
    %c0_14 = arith.constant 0 : index
    %c0_15 = arith.constant 0 : index
    %18 = vector.load %arg5[%c0_14, %c0_15] : memref<8x128xf32, #tpu.memory_space<vmem>>, vector<8x128xf32>
    tpu.vector_store %arg5[%c0_14, %c0_15], %17 {strides = array<i32>} : memref<8x128xf32, #tpu.memory_space<vmem>>, vector<8x128xf32>,
    return
  }
  func.func @transform_0(%arg0: i32, %arg1: i32) -> (i32, i32) {
    %c0_i32 = arith.constant 0 : i32
    %c0_i32_0 = arith.constant 0 : i32
    return %arg0, %c0_i32 : i32, i32
  }
  func.func @transform_1(%arg0: i32, %arg1: i32) -> (i32, i32) {
    %c0_i32 = arith.constant 0 : i32
    %c0_i32_0 = arith.constant 0 : i32
    return %c0_i32, %arg1 : i32, i32
  }
  func.func @transform_2(%arg0: i32, %arg1: i32) -> (i32, i32, i32) {
    %c0_i32 = arith.constant 0 : i32
    %c0_i32_0 = arith.constant 0 : i32
    %c0_i32_1 = arith.constant 0 : i32
    return %c0_i32, %arg1, %c0_i32_0 : i32, i32, i32
  }
  func.func @transform_3(%arg0: i32, %arg1: i32) -> (i32, i32) {
    %c0_i32 = arith.constant 0 : i32
    %c0_i32_0 = arith.constant 0 : i32
    return %arg0, %c0_i32 : i32, i32
  }
}

</mosaic_0001>

<bundles_post_ra>
// kernel: tpu_custom_call.1
= control target key start
LH: loop header
LB: loop body
LE: loop exit
PB: predicated region body
PF: predicated region fallthrough
CT: control target
= control target key end

     0   :  { %8 = vsyncpa [#allocation3], 0  ;;  %s3100_s0 = inlined_call_operand.hbm [shape: f32[8,1024], index: 0, kind: input, shape index: {}]   ;;  %s3101_s1 = inlined_call_operand.hbm [shape: f32[1024,1024], index: 1, kind: input, shape index: {}]   ;;  %s3102_s2 = inlined_call_operand.hbm [shape: f32[2,1024,128], index: 2, kind: input, shape index: {}]   ;;  %s3103_s3 = inlined_call_operand.hbm [shape: f32[8,128], index: 3, kind: output, shape index: {}]  }
   0x1   :  { %9 = vsyncpa [#allocation6], 0 }
   0x2   :  { %11 = vsyncpa [#allocation6 + $0x1], 0 }
   0x3   :  { %12 = vsyncpa [#allocation4], 0  ;;  %s2224_s12 = smov 0   ;;  %s2226_s13 = smov 0  }
   0x4   :  { %s2228_s14 = smov 0   ;;  %s2230_s15 = smov 0  }
   0x5   :  { %s2232_s16 = smov 0   ;;  %s2234_s17 = smov 0  }
   0x6 LB: > { %s2253_s18 = sadd.s32 4294967295, %s2190_s17   ;;  %s27_s19 = sadd.s32 1, %s2186_s16  ;;  %s2190_s17 = sphi %s2234_s17, %s18_s17   ;;  %s2186_s16 = sphi %s2232_s16, %s3111_s16   ;;  %s2182_s15 = sphi %s2230_s15, %s3110_s15   ;;  %s2178_s14 = sphi %s2228_s14, %s3109_s14   ;;  %s2174_s13 = sphi %s2226_s13, %s3108_s13   ;;  %s2170_s12 = sphi %s2224_s12, %s3107_s12  }
   0x7   : > { %p28_p0 = scmp.ge.s32.totalorder %s27_s19, 2  ;;  %s63_s20 = sadd.s32 1, %s2178_s14 }
   0x8   : > { %p70_p1 = scmp.ne.s32.totalorder %s2178_s14, %s2174_s13  ;;  %p71_p2 = scmp.eq.s32.totalorder %s2190_s17, 0 }
   0x9   : > { %s3113_s19 = smov (%p28_p0, %s27_s19), 0  ;;  %p76_p4 = scmp.ne.s32.totalorder %s2174_s13, %s2170_s12 }
   0xa   : > { %p2262_p3 = por %p71_p2, %p70_p1  ;;  %s60_s22 = ssub.s32 %s2186_s16, %s3113_s19 }
   0xb   : > { %p77_p5 = scmp.eq.s32.totalorder %s2253_s18, 0  ;;  %p61_p6 = scmp.eq.s32.totalorder %s60_s22, 0 }
   0xc   : > { %p1857_p7 = scmp.ge.s32.totalorder %s2190_s17, 1  ;;  %p139_p9 = scmp.lt.s32.totalorder %s2190_s17, 3 }
   0xd   : > { %p2273_p8 = por %p77_p5, %p76_p4  ;;  %s154_s28 = sshll.u32 %s3100_s0, 4  ;;  %s155_s28 = int_to_ptr.hbm [resolvable:$true] %s154_s28 }
   0xe   : > { %s2279_s24 = scalar_select %p61_p6, %s2178_s14, %s63_s20  }
   0xf   : > { %p2281_p10 = pnand %p1857_p7, %p139_p9  ;;  %s2192_s29 = smov [#allocation2]  }
  0x10   : > { %s156_s30 = sshll.u32 %s2192_s29, 4  ;;  %p1859_p13 = scmp.ge.s32.totalorder %s2190_s17, 2  ;;  %s157_s30 = int_to_ptr.vmem [resolvable:$true] %s156_s30 }
  0x11   : > { %p1962_p11 = pneg %p2281_p10  ;;  %s167_s4 = sand.u32 (!%p1859_p13), 1, %s2190_s17  }
  0x12   : > { %163 = sbr.rel (%p1859_p13) target bundleno = 40 (0x28), region = 20  ;;  %s169_s5 = sand.u32 (!%p1859_p13), 1, %s2178_s14  }
  0x13   : > { %p1963_p12 = pnand %p1962_p11, %p77_p5  ;;  %s1860_s6 = sshll.u32 (!%p1859_p13), %s169_s5, 12 }
  0x14   : > { %s1941_s7 = sshll.u32 (!%p1859_p13), %s2186_s16, 5  ;;  %s171_s11 = scalar_lea.vmem (!%p1859_p13), [#allocation5], %s1860_s6 }
  0x15   : > { %1965 = dma.hbm_to_vmem [thread:$0]  (!%p1963_p12), %s155_s28, 1024, %s157_s30, [#allocation3]  }
  0x16   : > { %s176_s10 = scalar_lea.hbm (!%p1859_p13), %s3101_s1, %s1941_s7  ;;  %s179_s12 = sshll.u32 (!%p1859_p13), %s171_s11, 4  ;;  %s180_s12 = int_to_ptr.vmem [resolvable:$true] %s179_s12 }
  0x17   : > { %s177_s20 = sshll.u32 %s176_s10, 4  ;;  %s2299_s22 = scalar_lea.sflag [#allocation6], %s167_s4  ;;  %s178_s20 = int_to_ptr.hbm [resolvable:$true] %s177_s20 }
  0x18   : > { %s2193_s26 = smov 1024   ;;  %s2194_s27 = smov 512  }
  0x19   : > { %s2195_s28 = smov 32  }
  0x1a   : > { %1945 = dma.hbm_to_vmem [thread:$0]  (%p2262_p3), %s178_s20, 65536, %s180_s12, %s2299_s22, %s2193_s26, %s2194_s27, %s2195_s28  }
  0x1b   : > { %s1863_s29 = sshll.u32 %s169_s5, 10  ;;  %s1942_s30 = sshll.u32 %s2186_s16, 9 }
  0x1c   : > { %s198_s8 = scalar_lea.hbm %s3102_s2, %s1942_s30  ;;  %s193_s10 = scalar_lea.vmem [#allocation7], %s1863_s29 }
  0x1d   : > { %s1946_s4 = scalar_select %p2262_p3, [#allocation0], [#allocation11] }
  0x1e   : > { %s211_s9 = sshll.u32 %s198_s8, 4  ;;  %s213_s11 = sshll.u32 %s193_s10, 4  ;;  %s212_s9 = int_to_ptr.hbm [resolvable:$true] %s211_s9  ;;  %s214_s11 = int_to_ptr.vmem [resolvable:$true] %s213_s11 }
  0x1f   : > { %s203_s12 = sld [smem:[%s1946_s4]]   ;;  %s2196_s5 = smov 16384  }
  0x20   : > { %1947 = sst [smem:[#allocation10]] (%p2262_p3), %s2196_s5  ;;  %s2197_s20 = smov 8192  }
  0x21   : > { %1948 = sst [smem:[#allocation10 + $0x1]] (%p2262_p3), %s2197_s20  ;;  %s2198_s26 = smov 64  }
  0x22   : > { %1949 = sst [smem:[#allocation10 + $0x2]] (%p2262_p3), %s2198_s26  ;;  %s2199_s27 = smov 128  }
  0x23   : > { %1950 = sst [smem:[#allocation10 + $0x3]] (%p2262_p3), %s2199_s27  ;;  %s2200_s30 = smov 8  }
  0x24   : > { %1951 = sst [smem:[#allocation10 + $0x4]] (%p2262_p3), %s2199_s27  ;;  %s2201_s6 = smov [#allocation9]  }
  0x25   : > { %s1866_s28 = sshll.u32 %s203_s12, 26  ;;  %1952 = sst [smem:[#allocation10 + $0x5]] (%p2262_p3), %s2200_s30 }
  0x26   : > { %s1867_s29 = sadd.s32 134217728, %s1866_s28 }
  0x27   : > { %1953 = dma.general (%p2262_p3), %s212_s9, 16384, %s214_s11, %s2299_s22, %s2201_s6, [#allocation10], %s1867_s29, 0  }
  0x28 PF: > { %238 = sbr.rel (%p2281_p10) target bundleno = 718 (0x2ce), region = 32 }
  0x2d   : > { %2157 = dma.done.wait (%p77_p5), [#allocation3], 1024  }
  0x2e   : > { %2159 = vsyncadd (%p77_p5), [#allocation3], 4294966272  ;;  %s245_s7 = sand.u32 1, %s2253_s18   ;;  %s247_s8 = sand.u32 1, %s2174_s13  }
  0x2f   : > { %s1870_s4 = sshll.u32 %s247_s8, 12  ;;  %s246_s10 = scalar_lea.sflag [#allocation6], %s245_s7 }
  0x30   : > { %s2333_s12 = scalar_lea.vmem [#allocation5], %s1870_s4 }
  0x31   : > { %2161 = dma.done.wait (%p2273_p8), %s246_s10, 81920  }
  0x32   : > { %2163 = vsyncadd (%p2273_p8), %s246_s10, 4294885376  ;;  %s1871_s21 = sshll.u32 %s247_s8, 10  ;;  %p1872_p0 = scmp.ne.s32.totalorder %s2182_s15, 0 }
  0x33   : > { %s2339_s25 = scalar_lea.vmem [#allocation7], %s1871_s21 }
  0x34   : > { %288 = sbr.rel (%p1872_p0) target bundleno = 59 (0x3b), region = 48 }
  0x39   : > { %v2202_v0 = vmov 0.0  }
  0x3a   : > { %289 = vst [vmem:[#allocation8] sm:$0xff] %v2202_v0 }
  0x3b PF: > { %v358_v1 = vld [vmem:[%s2333_s12 + $0x1e0] sm:$0xff]  ;;  %s2203_s15 = smov [#allocation8]   ;;  %s1760_s11 = sshll.u32 %s3103_s3, 4  ;;  %s1761_s11 = int_to_ptr.hbm [resolvable:$true] %s1760_s11 }
  0x3c   : > { %v422_v2 = vld [vmem:[%s2333_s12 + $0x3e0] sm:$0xff]  ;;  %810 = vmatpush.msra.mxu0 %v358_v1  ;;  %s1758_s23 = sshll.u32 %s2203_s15, 4  ;;  %p1968_p1 = scmp.eq.s32.totalorder %s2253_s18, 1  ;;  %s1759_s23 = int_to_ptr.vmem [resolvable:$true] %s1758_s23 }
  0x3d   : > { %v486_v3 = vld [vmem:[%s2333_s12 + $0x5e0] sm:$0xff]  ;;  %830 = vmatpush.msra.mxu1 %v422_v2 }
  0x3e   : > { %v354_v4 = vld [vmem:[%s2333_s12 + $0x1c0] sm:$0xff]  ;;  %850 = vmatpush.msra.mxu2 %v486_v3 }
  0x3f   : > { %v418_v5 = vld [vmem:[%s2333_s12 + $0x3c0] sm:$0xff]  ;;  %811 = vmatpush.msra.mxu0 %v354_v4 }
  0x40   : > { %v482_v6 = vld [vmem:[%s2333_s12 + $0x5c0] sm:$0xff]  ;;  %831 = vmatpush.msra.mxu1 %v418_v5 }
  0x41   : > { %v550_v7 = vld [vmem:[%s2333_s12 + $0x7e0] sm:$0xff]  ;;  %851 = vmatpush.msra.mxu2 %v482_v6 }
  0x42   : > { %v350_v8 = vld [vmem:[%s2333_s12 + $0x1a0] sm:$0xff]  ;;  %870 = vmatpush.msra.mxu3 %v550_v7 }
  0x43   : > { %v414_v9 = vld [vmem:[%s2333_s12 + $0x3a0] sm:$0xff]  ;;  %812 = vmatpush.msra.mxu0 %v350_v8 }
  0x44   : > { %v478_v10 = vld [vmem:[%s2333_s12 + $0x5a0] sm:$0xff]  ;;  %832 = vmatpush.msra.mxu1 %v414_v9 }
  0x45   : > { %v546_v11 = vld [vmem:[%s2333_s12 + $0x7c0] sm:$0xff]  ;;  %852 = vmatpush.msra.mxu2 %v478_v10 }
  0x46   : > { %v346_v12 = vld [vmem:[%s2333_s12 + $0x180] sm:$0xff]  ;;  %871 = vmatpush.msra.mxu3 %v546_v11 }
  0x47   : > { %v410_v13 = vld [vmem:[%s2333_s12 + $0x380] sm:$0xff]  ;;  %813 = vmatpush.msra.mxu0 %v346_v12 }
  0x48   : > { %v474_v14 = vld [vmem:[%s2333_s12 + $0x580] sm:$0xff]  ;;  %833 = vmatpush.msra.mxu1 %v410_v13 }
  0x49   : > { %v542_v15 = vld [vmem:[%s2333_s12 + $0x7a0] sm:$0xff]  ;;  %853 = vmatpush.msra.mxu2 %v474_v14 }
  0x4a   : > { %v342_v16 = vld [vmem:[%s2333_s12 + $0x160] sm:$0xff]  ;;  %872 = vmatpush.msra.mxu3 %v542_v15 }
  0x4b   : > { %v406_v17 = vld [vmem:[%s2333_s12 + $0x360] sm:$0xff]  ;;  %814 = vmatpush.msra.mxu0 %v342_v16 }
  0x4c   : > { %v470_v18 = vld [vmem:[%s2333_s12 + $0x560] sm:$0xff]  ;;  %834 = vmatpush.msra.mxu1 %v406_v17 }
  0x4d   : > { %v538_v19 = vld [vmem:[%s2333_s12 + $0x780] sm:$0xff]  ;;  %854 = vmatpush.msra.mxu2 %v470_v18 }
  0x4e   : > { %v338_v20 = vld [vmem:[%s2333_s12 + $0x140] sm:$0xff]  ;;  %873 = vmatpush.msra.mxu3 %v538_v19 }
  0x4f   : > { %v402_v21 = vld [vmem:[%s2333_s12 + $0x340] sm:$0xff]  ;;  %815 = vmatpush.msra.mxu0 %v338_v20 }
  0x50   : > { %v466_v22 = vld [vmem:[%s2333_s12 + $0x540] sm:$0xff]  ;;  %835 = vmatpush.msra.mxu1 %v402_v21 }
  0x51   : > { %v534_v23 = vld [vmem:[%s2333_s12 + $0x760] sm:$0xff]  ;;  %855 = vmatpush.msra.mxu2 %v466_v22 }
  0x52   : > { %v334_v24 = vld [vmem:[%s2333_s12 + $0x120] sm:$0xff]  ;;  %874 = vmatpush.msra.mxu3 %v534_v23 }
  0x53   : > { %v398_v25 = vld [vmem:[%s2333_s12 + $0x320] sm:$0xff]  ;;  %816 = vmatpush.msra.mxu0 %v334_v24 }
  0x54   : > { %v462_v26 = vld [vmem:[%s2333_s12 + $0x520] sm:$0xff]  ;;  %836 = vmatpush.msra.mxu1 %v398_v25 }
  0x55   : > { %v530_v27 = vld [vmem:[%s2333_s12 + $0x740] sm:$0xff]  ;;  %856 = vmatpush.msra.mxu2 %v462_v26 }
  0x56   : > { %v330_v28 = vld [vmem:[%s2333_s12 + $0x100] sm:$0xff]  ;;  %875 = vmatpush.msra.mxu3 %v530_v27 }
  0x57   : > { %v394_v29 = vld [vmem:[%s2333_s12 + $0x300] sm:$0xff]  ;;  %817 = vmatpush.msra.mxu0 %v330_v28 }
  0x58   : > { %v458_v30 = vld [vmem:[%s2333_s12 + $0x500] sm:$0xff]  ;;  %837 = vmatpush.msra.mxu1 %v394_v29 }
  0x59   : > { %v526_v31 = vld [vmem:[%s2333_s12 + $0x720] sm:$0xff]  ;;  %857 = vmatpush.msra.mxu2 %v458_v30 }
  0x5a   : > { %v326_v32 = vld [vmem:[%s2333_s12 + $0xe0] sm:$0xff]  ;;  %876 = vmatpush.msra.mxu3 %v526_v31 }
  0x5b   : > { %v390_v33 = vld [vmem:[%s2333_s12 + $0x2e0] sm:$0xff]  ;;  %818 = vmatpush.msra.mxu0 %v326_v32 }
  0x5c   : > { %v454_v34 = vld [vmem:[%s2333_s12 + $0x4e0] sm:$0xff]  ;;  %838 = vmatpush.msra.mxu1 %v390_v33 }
  0x5d   : > { %v522_v35 = vld [vmem:[%s2333_s12 + $0x700] sm:$0xff]  ;;  %858 = vmatpush.msra.mxu2 %v454_v34 }
  0x5e   : > { %v322_v36 = vld [vmem:[%s2333_s12 + $0xc0] sm:$0xff]  ;;  %877 = vmatpush.msra.mxu3 %v522_v35 }
  0x5f   : > { %v386_v37 = vld [vmem:[%s2333_s12 + $0x2c0] sm:$0xff]  ;;  %819 = vmatpush.msra.mxu0 %v322_v36 }
  0x60   : > { %v450_v38 = vld [vmem:[%s2333_s12 + $0x4c0] sm:$0xff]  ;;  %839 = vmatpush.msra.mxu1 %v386_v37 }
  0x61   : > { %v518_v39 = vld [vmem:[%s2333_s12 + $0x6e0] sm:$0xff]  ;;  %859 = vmatpush.msra.mxu2 %v450_v38 }
  0x62   : > { %v318_v40 = vld [vmem:[%s2333_s12 + $0xa0] sm:$0xff]  ;;  %878 = vmatpush.msra.mxu3 %v518_v39 }
  0x63   : > { %v382_v41 = vld [vmem:[%s2333_s12 + $0x2a0] sm:$0xff]  ;;  %820 = vmatpush.msra.mxu0 %v318_v40 }
  0x64   : > { %v446_v42 = vld [vmem:[%s2333_s12 + $0x4a0] sm:$0xff]  ;;  %840 = vmatpush.msra.mxu1 %v382_v41 }
  0x65   : > { %v514_v43 = vld [vmem:[%s2333_s12 + $0x6c0] sm:$0xff]  ;;  %860 = vmatpush.msra.mxu2 %v446_v42 }
  0x66   : > { %v314_v44 = vld [vmem:[%s2333_s12 + $0x80] sm:$0xff]  ;;  %879 = vmatpush.msra.mxu3 %v514_v43 }
  0x67   : > { %v378_v45 = vld [vmem:[%s2333_s12 + $0x280] sm:$0xff]  ;;  %821 = vmatpush.msra.mxu0 %v314_v44 }
  0x68   : > { %v442_v46 = vld [vmem:[%s2333_s12 + $0x480] sm:$0xff]  ;;  %841 = vmatpush.msra.mxu1 %v378_v45 }
  0x69   : > { %v510_v47 = vld [vmem:[%s2333_s12 + $0x6a0] sm:$0xff]  ;;  %861 = vmatpush.msra.mxu2 %v442_v46 }
  0x6a   : > { %v310_v48 = vld [vmem:[%s2333_s12 + $0x60] sm:$0xff]  ;;  %880 = vmatpush.msra.mxu3 %v510_v47 }
  0x6b   : > { %v374_v49 = vld [vmem:[%s2333_s12 + $0x260] sm:$0xff]  ;;  %822 = vmatpush.msra.mxu0 %v310_v48 }
  0x6c   : > { %v438_v50 = vld [vmem:[%s2333_s12 + $0x460] sm:$0xff]  ;;  %842 = vmatpush.msra.mxu1 %v374_v49 }
  0x6d   : > { %v506_v51 = vld [vmem:[%s2333_s12 + $0x680] sm:$0xff]  ;;  %862 = vmatpush.msra.mxu2 %v438_v50 }
  0x6e   : > { %v306_v52 = vld [vmem:[%s2333_s12 + $0x40] sm:$0xff]  ;;  %881 = vmatpush.msra.mxu3 %v506_v51 }
  0x6f   : > { %v370_v53 = vld [vmem:[%s2333_s12 + $0x240] sm:$0xff]  ;;  %823 = vmatpush.msra.mxu0 %v306_v52 }
  0x70   : > { %v434_v54 = vld [vmem:[%s2333_s12 + $0x440] sm:$0xff]  ;;  %843 = vmatpush.msra.mxu1 %v370_v53 }
  0x71   : > { %v502_v55 = vld [vmem:[%s2333_s12 + $0x660] sm:$0xff]  ;;  %863 = vmatpush.msra.mxu2 %v434_v54 }
  0x72   : > { %v302_v56 = vld [vmem:[%s2333_s12 + $0x20] sm:$0xff]  ;;  %882 = vmatpush.msra.mxu3 %v502_v55 }
  0x73   : > { %v366_v57 = vld [vmem:[%s2333_s12 + $0x220] sm:$0xff]  ;;  %824 = vmatpush.msra.mxu0 %v302_v56 }
  0x74   : > { %v430_v58 = vld [vmem:[%s2333_s12 + $0x420] sm:$0xff]  ;;  %844 = vmatpush.msra.mxu1 %v366_v57 }
  0x75   : > { %v498_v59 = vld [vmem:[%s2333_s12 + $0x640] sm:$0xff]  ;;  %864 = vmatpush.msra.mxu2 %v430_v58 }
  0x76   : > { %v298_v60 = vld [vmem:[%s2333_s12] sm:$0xff]  ;;  %883 = vmatpush.msra.mxu3 %v498_v59 }
  0x77   : > { %v362_v61 = vld [vmem:[%s2333_s12 + $0x200] sm:$0xff]  ;;  %825 = vmatpush.msra.mxu0 %v298_v60  ;;  %v2465_v60 = vld [vmem:[#allocation2 + $0x10] sm:$0xff] }
  0x78   : > { %v426_v62 = vld [vmem:[%s2333_s12 + $0x400] sm:$0xff]  ;;  %845 = vmatpush.msra.mxu1 %v362_v61 }
  0x79   : > { %v494_v63 = vld [vmem:[%s2333_s12 + $0x620] sm:$0xff]  ;;  %865 = vmatpush.msra.mxu2 %v426_v62 }
  0x7a   : > { %v614_v0 = vld [vmem:[%s2333_s12 + $0x9e0] sm:$0xff]  ;;  %884 = vmatpush.msra.mxu3 %v494_v63  ;;  %866 = vmatmul.f32.vlgmr.msra.gmra.mxu2 %v2465_v60 }
  0x7b   : > { %v678_v1 = vld [vmem:[%s2333_s12 + $0xbe0] sm:$0xff]  ;;  %890 = vmatpush.msrb.mxu0 %v614_v0 }
  0x7c   : > { %v742_v2 = vld [vmem:[%s2333_s12 + $0xde0] sm:$0xff]  ;;  %910 = vmatpush.msrb.mxu1 %v678_v1 }
  0x7d   : > { %v490_v3 = vld [vmem:[%s2333_s12 + $0x600] sm:$0xff]  ;;  %930 = vmatpush.msrb.mxu2 %v742_v2  ;;  %v2474_v2 = vld [vmem:[#allocation2 + $0x8] sm:$0xff] }
  0x7e   : > { %v610_v4 = vld [vmem:[%s2333_s12 + $0x9c0] sm:$0xff]  ;;  %885 = vmatpush.msra.mxu3 %v490_v3  ;;  %v2476_v3 = vld [vmem:[#allocation2 + $0x18] sm:$0xff]  ;;  %846 = vmatmul.f32.vlgmr.msra.gmra.mxu1 %v2474_v2 }
  0x7f   : > { %v674_v5 = vld [vmem:[%s2333_s12 + $0xbc0] sm:$0xff]  ;;  %891 = vmatpush.msrb.mxu0 %v610_v4  ;;  %v359_v4 = vld [vmem:[%s2333_s12 + $0x1e8] sm:$0xff]  ;;  %886 = vmatmul.f32.vlgmr.msra.gmra.mxu3 %v2476_v3 }
  0x80   : > { %v738_v6 = vld [vmem:[%s2333_s12 + $0xdc0] sm:$0xff]  ;;  %911 = vmatpush.msrb.mxu1 %v674_v5  ;;  %v423_v5 = vld [vmem:[%s2333_s12 + $0x3e8] sm:$0xff] }
  0x81   : > { %v806_v7 = vld [vmem:[%s2333_s12 + $0xfe0] sm:$0xff]  ;;  %931 = vmatpush.msrb.mxu2 %v738_v6  ;;  %v487_v6 = vld [vmem:[%s2333_s12 + $0x5e8] sm:$0xff] }
  0x82   : > { %v606_v8 = vld [vmem:[%s2333_s12 + $0x9a0] sm:$0xff]  ;;  %950 = vmatpush.msrb.mxu3 %v806_v7 }
  0x83   : > { %v670_v9 = vld [vmem:[%s2333_s12 + $0xba0] sm:$0xff]  ;;  %892 = vmatpush.msrb.mxu0 %v606_v8  ;;  %v355_v8 = vld [vmem:[%s2333_s12 + $0x1c8] sm:$0xff] }
  0x84   : > { %v734_v10 = vld [vmem:[%s2333_s12 + $0xda0] sm:$0xff]  ;;  %912 = vmatpush.msrb.mxu1 %v670_v9  ;;  %v419_v9 = vld [vmem:[%s2333_s12 + $0x3c8] sm:$0xff] }
  0x85   : > { %v802_v11 = vld [vmem:[%s2333_s12 + $0xfc0] sm:$0xff]  ;;  %932 = vmatpush.msrb.mxu2 %v734_v10  ;;  %v483_v10 = vld [vmem:[%s2333_s12 + $0x5c8] sm:$0xff] }
  0x86   : > { %v602_v12 = vld [vmem:[%s2333_s12 + $0x980] sm:$0xff]  ;;  %951 = vmatpush.msrb.mxu3 %v802_v11  ;;  %v551_v11 = vld [vmem:[%s2333_s12 + $0x7e8] sm:$0xff] }
  0x87   : > { %v666_v13 = vld [vmem:[%s2333_s12 + $0xb80] sm:$0xff]  ;;  %893 = vmatpush.msrb.mxu0 %v602_v12  ;;  %v351_v12 = vld [vmem:[%s2333_s12 + $0x1a8] sm:$0xff] }
  0x88   : > { %v730_v14 = vld [vmem:[%s2333_s12 + $0xd80] sm:$0xff]  ;;  %913 = vmatpush.msrb.mxu1 %v666_v13  ;;  %v415_v13 = vld [vmem:[%s2333_s12 + $0x3a8] sm:$0xff] }
  0x89   : > { %v798_v15 = vld [vmem:[%s2333_s12 + $0xfa0] sm:$0xff]  ;;  %933 = vmatpush.msrb.mxu2 %v730_v14  ;;  %v479_v14 = vld [vmem:[%s2333_s12 + $0x5a8] sm:$0xff] }
  0x8a   : > { %v598_v16 = vld [vmem:[%s2333_s12 + $0x960] sm:$0xff]  ;;  %952 = vmatpush.msrb.mxu3 %v798_v15  ;;  %v547_v15 = vld [vmem:[%s2333_s12 + $0x7c8] sm:$0xff] }
  0x8b   : > { %v662_v17 = vld [vmem:[%s2333_s12 + $0xb60] sm:$0xff]  ;;  %894 = vmatpush.msrb.mxu0 %v598_v16  ;;  %v2493_v16 = vld [vmem:[#allocation2 + $0x30] sm:$0xff] }
  0x8c   : > { %v726_v18 = vld [vmem:[%s2333_s12 + $0xd60] sm:$0xff]  ;;  %914 = vmatpush.msrb.mxu1 %v662_v17  ;;  %v347_v17 = vld [vmem:[%s2333_s12 + $0x188] sm:$0xff] }
  0x8d   : > { %v794_v19 = vld [vmem:[%s2333_s12 + $0xf80] sm:$0xff]  ;;  %934 = vmatpush.msrb.mxu2 %v726_v18  ;;  %v411_v18 = vld [vmem:[%s2333_s12 + $0x388] sm:$0xff] }
  0x8e   : > { %v594_v20 = vld [vmem:[%s2333_s12 + $0x940] sm:$0xff]  ;;  %953 = vmatpush.msrb.mxu3 %v794_v19  ;;  %v475_v19 = vld [vmem:[%s2333_s12 + $0x588] sm:$0xff] }
  0x8f   : > { %v658_v21 = vld [vmem:[%s2333_s12 + $0xb40] sm:$0xff]  ;;  %895 = vmatpush.msrb.mxu0 %v594_v20  ;;  %v543_v20 = vld [vmem:[%s2333_s12 + $0x7a8] sm:$0xff] }
  0x90   : > { %v722_v22 = vld [vmem:[%s2333_s12 + $0xd40] sm:$0xff]  ;;  %915 = vmatpush.msrb.mxu1 %v658_v21 }
  0x91   : > { %v790_v23 = vld [vmem:[%s2333_s12 + $0xf60] sm:$0xff]  ;;  %935 = vmatpush.msrb.mxu2 %v722_v22  ;;  %v2502_v22 = vld [vmem:[#allocation2 + $0x38] sm:$0xff] }
  0x92   : > { %v590_v24 = vld [vmem:[%s2333_s12 + $0x920] sm:$0xff]  ;;  %954 = vmatpush.msrb.mxu3 %v790_v23  ;;  %v343_v23 = vld [vmem:[%s2333_s12 + $0x168] sm:$0xff] }
  0x93   : > { %v654_v25 = vld [vmem:[%s2333_s12 + $0xb20] sm:$0xff]  ;;  %896 = vmatpush.msrb.mxu0 %v590_v24  ;;  %v407_v24 = vld [vmem:[%s2333_s12 + $0x368] sm:$0xff] }
  0x94   : > { %v718_v26 = vld [vmem:[%s2333_s12 + $0xd20] sm:$0xff]  ;;  %916 = vmatpush.msrb.mxu1 %v654_v25  ;;  %v471_v25 = vld [vmem:[%s2333_s12 + $0x568] sm:$0xff] }
  0x95   : > { %v786_v27 = vld [vmem:[%s2333_s12 + $0xf40] sm:$0xff]  ;;  %936 = vmatpush.msrb.mxu2 %v718_v26  ;;  %v539_v26 = vld [vmem:[%s2333_s12 + $0x788] sm:$0xff] }
  0x96   : > { %v586_v28 = vld [vmem:[%s2333_s12 + $0x900] sm:$0xff]  ;;  %955 = vmatpush.msrb.mxu3 %v786_v27  ;;  %v2509_v27 = vld [vmem:[#allocation2 + $0x28] sm:$0xff] }
  0x97   : > { %v650_v29 = vld [vmem:[%s2333_s12 + $0xb00] sm:$0xff]  ;;  %897 = vmatpush.msrb.mxu0 %v586_v28  ;;  %v339_v28 = vld [vmem:[%s2333_s12 + $0x148] sm:$0xff] }
  0x98   : > { %v714_v30 = vld [vmem:[%s2333_s12 + $0xd00] sm:$0xff]  ;;  %917 = vmatpush.msrb.mxu1 %v650_v29  ;;  %v403_v29 = vld [vmem:[%s2333_s12 + $0x348] sm:$0xff] }
  0x99   : > { %v782_v31 = vld [vmem:[%s2333_s12 + $0xf20] sm:$0xff]  ;;  %937 = vmatpush.msrb.mxu2 %v714_v30  ;;  %v467_v30 = vld [vmem:[%s2333_s12 + $0x548] sm:$0xff] }
  0x9a   : > { %v582_v32 = vld [vmem:[%s2333_s12 + $0x8e0] sm:$0xff]  ;;  %956 = vmatpush.msrb.mxu3 %v782_v31  ;;  %v535_v31 = vld [vmem:[%s2333_s12 + $0x768] sm:$0xff] }
  0x9b   : > { %v646_v33 = vld [vmem:[%s2333_s12 + $0xae0] sm:$0xff]  ;;  %898 = vmatpush.msrb.mxu0 %v582_v32  ;;  %v335_v32 = vld [vmem:[%s2333_s12 + $0x128] sm:$0xff] }
  0x9c   : > { %v710_v34 = vld [vmem:[%s2333_s12 + $0xce0] sm:$0xff]  ;;  %918 = vmatpush.msrb.mxu1 %v646_v33  ;;  %v399_v33 = vld [vmem:[%s2333_s12 + $0x328] sm:$0xff] }
  0x9d   : > { %v778_v35 = vld [vmem:[%s2333_s12 + $0xf00] sm:$0xff]  ;;  %938 = vmatpush.msrb.mxu2 %v710_v34  ;;  %v463_v34 = vld [vmem:[%s2333_s12 + $0x528] sm:$0xff] }
  0x9e   : > { %v578_v36 = vld [vmem:[%s2333_s12 + $0x8c0] sm:$0xff]  ;;  %957 = vmatpush.msrb.mxu3 %v778_v35  ;;  %v531_v35 = vld [vmem:[%s2333_s12 + $0x748] sm:$0xff] }
  0x9f   : > { %v642_v37 = vld [vmem:[%s2333_s12 + $0xac0] sm:$0xff]  ;;  %899 = vmatpush.msrb.mxu0 %v578_v36  ;;  %v331_v36 = vld [vmem:[%s2333_s12 + $0x108] sm:$0xff] }
  0xa0   : > { %v706_v38 = vld [vmem:[%s2333_s12 + $0xcc0] sm:$0xff]  ;;  %919 = vmatpush.msrb.mxu1 %v642_v37  ;;  %v395_v37 = vld [vmem:[%s2333_s12 + $0x308] sm:$0xff] }
  0xa1   : > { %v774_v39 = vld [vmem:[%s2333_s12 + $0xee0] sm:$0xff]  ;;  %939 = vmatpush.msrb.mxu2 %v706_v38  ;;  %v459_v38 = vld [vmem:[%s2333_s12 + $0x508] sm:$0xff] }
  0xa2   : > { %v574_v40 = vld [vmem:[%s2333_s12 + $0x8a0] sm:$0xff]  ;;  %958 = vmatpush.msrb.mxu3 %v774_v39  ;;  %v527_v39 = vld [vmem:[%s2333_s12 + $0x728] sm:$0xff] }
  0xa3   : > { %v638_v41 = vld [vmem:[%s2333_s12 + $0xaa0] sm:$0xff]  ;;  %900 = vmatpush.msrb.mxu0 %v574_v40  ;;  %v327_v40 = vld [vmem:[%s2333_s12 + $0xe8] sm:$0xff] }
  0xa4   : > { %v702_v42 = vld [vmem:[%s2333_s12 + $0xca0] sm:$0xff]  ;;  %920 = vmatpush.msrb.mxu1 %v638_v41  ;;  %v391_v41 = vld [vmem:[%s2333_s12 + $0x2e8] sm:$0xff] }
  0xa5   : > { %v770_v43 = vld [vmem:[%s2333_s12 + $0xec0] sm:$0xff]  ;;  %940 = vmatpush.msrb.mxu2 %v702_v42  ;;  %v455_v42 = vld [vmem:[%s2333_s12 + $0x4e8] sm:$0xff] }
  0xa6   : > { %v570_v44 = vld [vmem:[%s2333_s12 + $0x880] sm:$0xff]  ;;  %959 = vmatpush.msrb.mxu3 %v770_v43  ;;  %v523_v43 = vld [vmem:[%s2333_s12 + $0x708] sm:$0xff] }
  0xa7   : > { %v634_v45 = vld [vmem:[%s2333_s12 + $0xa80] sm:$0xff]  ;;  %901 = vmatpush.msrb.mxu0 %v570_v44  ;;  %v323_v44 = vld [vmem:[%s2333_s12 + $0xc8] sm:$0xff] }
  0xa8   : > { %v698_v46 = vld [vmem:[%s2333_s12 + $0xc80] sm:$0xff]  ;;  %921 = vmatpush.msrb.mxu1 %v634_v45  ;;  %v387_v45 = vld [vmem:[%s2333_s12 + $0x2c8] sm:$0xff] }
  0xa9   : > { %v766_v47 = vld [vmem:[%s2333_s12 + $0xea0] sm:$0xff]  ;;  %941 = vmatpush.msrb.mxu2 %v698_v46  ;;  %v451_v46 = vld [vmem:[%s2333_s12 + $0x4c8] sm:$0xff] }
  0xaa   : > { %v566_v48 = vld [vmem:[%s2333_s12 + $0x860] sm:$0xff]  ;;  %960 = vmatpush.msrb.mxu3 %v766_v47  ;;  %v519_v47 = vld [vmem:[%s2333_s12 + $0x6e8] sm:$0xff] }
  0xab   : > { %v630_v49 = vld [vmem:[%s2333_s12 + $0xa60] sm:$0xff]  ;;  %902 = vmatpush.msrb.mxu0 %v566_v48  ;;  %v319_v48 = vld [vmem:[%s2333_s12 + $0xa8] sm:$0xff] }
  0xac   : > { %v694_v50 = vld [vmem:[%s2333_s12 + $0xc60] sm:$0xff]  ;;  %922 = vmatpush.msrb.mxu1 %v630_v49  ;;  %v383_v49 = vld [vmem:[%s2333_s12 + $0x2a8] sm:$0xff] }
  0xad   : > { %v762_v51 = vld [vmem:[%s2333_s12 + $0xe80] sm:$0xff]  ;;  %942 = vmatpush.msrb.mxu2 %v694_v50  ;;  %v447_v50 = vld [vmem:[%s2333_s12 + $0x4a8] sm:$0xff] }
  0xae   : > { %v562_v52 = vld [vmem:[%s2333_s12 + $0x840] sm:$0xff]  ;;  %961 = vmatpush.msrb.mxu3 %v762_v51  ;;  %v515_v51 = vld [vmem:[%s2333_s12 + $0x6c8] sm:$0xff] }
  0xaf   : > { %v626_v53 = vld [vmem:[%s2333_s12 + $0xa40] sm:$0xff]  ;;  %903 = vmatpush.msrb.mxu0 %v562_v52  ;;  %v315_v52 = vld [vmem:[%s2333_s12 + $0x88] sm:$0xff] }
  0xb0   : > { %v690_v54 = vld [vmem:[%s2333_s12 + $0xc40] sm:$0xff]  ;;  %923 = vmatpush.msrb.mxu1 %v626_v53  ;;  %v379_v53 = vld [vmem:[%s2333_s12 + $0x288] sm:$0xff] }
  0xb1   : > { %v758_v55 = vld [vmem:[%s2333_s12 + $0xe60] sm:$0xff]  ;;  %943 = vmatpush.msrb.mxu2 %v690_v54  ;;  %v443_v54 = vld [vmem:[%s2333_s12 + $0x488] sm:$0xff] }
  0xb2   : > { %v558_v56 = vld [vmem:[%s2333_s12 + $0x820] sm:$0xff]  ;;  %962 = vmatpush.msrb.mxu3 %v758_v55  ;;  %v511_v55 = vld [vmem:[%s2333_s12 + $0x6a8] sm:$0xff] }
  0xb3   : > { %v622_v57 = vld [vmem:[%s2333_s12 + $0xa20] sm:$0xff]  ;;  %904 = vmatpush.msrb.mxu0 %v558_v56  ;;  %v311_v56 = vld [vmem:[%s2333_s12 + $0x68] sm:$0xff] }
  0xb4   : > { %v686_v58 = vld [vmem:[%s2333_s12 + $0xc20] sm:$0xff]  ;;  %924 = vmatpush.msrb.mxu1 %v622_v57  ;;  %v375_v57 = vld [vmem:[%s2333_s12 + $0x268] sm:$0xff] }
  0xb5   : > { %v754_v59 = vld [vmem:[%s2333_s12 + $0xe40] sm:$0xff]  ;;  %944 = vmatpush.msrb.mxu2 %v686_v58  ;;  %v439_v58 = vld [vmem:[%s2333_s12 + $0x468] sm:$0xff] }
  0xb6   : > { %v554_v61 = vld [vmem:[%s2333_s12 + $0x800] sm:$0xff]  ;;  %963 = vmatpush.msrb.mxu3 %v754_v59  ;;  %v507_v59 = vld [vmem:[%s2333_s12 + $0x688] sm:$0xff] }
  0xb7   : > { %v618_v62 = vld [vmem:[%s2333_s12 + $0xa00] sm:$0xff]  ;;  %905 = vmatpush.msrb.mxu0 %v554_v61  ;;  %v307_v61 = vld [vmem:[%s2333_s12 + $0x48] sm:$0xff] }
  0xb8   : > { %v682_v63 = vld [vmem:[%s2333_s12 + $0xc00] sm:$0xff]  ;;  %925 = vmatpush.msrb.mxu1 %v618_v62  ;;  %v371_v62 = vld [vmem:[%s2333_s12 + $0x248] sm:$0xff] }
  0xb9   : > { %v750_v0 = vld [vmem:[%s2333_s12 + $0xe20] sm:$0xff]  ;;  %945 = vmatpush.msrb.mxu2 %v682_v63  ;;  %926 = vmatmul.f32.vlgmr.msrb.gmra.mxu1 %v2509_v27  ;;  %v435_v63 = vld [vmem:[%s2333_s12 + $0x448] sm:$0xff] }
  0xba   : > { %v2471_v1 = vld [vmem:[#allocation2] sm:$0xff]  ;;  %964 = vmatpush.msrb.mxu3 %v750_v0  ;;  %990 = vmatpush.msra.mxu1 %v423_v5  ;;  %v503_v0 = vld [vmem:[%s2333_s12 + $0x668] sm:$0xff] }
  0xbb   : > { %826 = vmatmul.f32.vlgmr.msra.gmra.mxu0 %v2471_v1  ;;  %v746_v7 = vld [vmem:[%s2333_s12 + $0xe00] sm:$0xff]  ;;  %1010 = vmatpush.msra.mxu2 %v487_v6  ;;  %v367_v5 = vld [vmem:[%s2333_s12 + $0x228] sm:$0xff] }
  0xbc   : > { %970 = vmatpush.msra.mxu0 %v359_v4  ;;  %965 = vmatpush.msrb.mxu3 %v746_v7  ;;  %v2499_v21 = vld [vmem:[#allocation2 + $0x20] sm:$0xff]  ;;  %v303_v4 = vld [vmem:[%s2333_s12 + $0x28] sm:$0xff] }
  0xbd   : > { %991 = vmatpush.msra.mxu1 %v419_v9  ;;  %1011 = vmatpush.msra.mxu2 %v483_v10  ;;  %v431_v6 = vld [vmem:[%s2333_s12 + $0x428] sm:$0xff] }
  0xbe   : > { %971 = vmatpush.msra.mxu0 %v355_v8  ;;  %1030 = vmatpush.msra.mxu3 %v551_v11  ;;  %v499_v7 = vld [vmem:[%s2333_s12 + $0x648] sm:$0xff] }
  0xbf   : > { %992 = vmatpush.msra.mxu1 %v415_v13  ;;  %1012 = vmatpush.msra.mxu2 %v479_v14  ;;  %v299_v8 = vld [vmem:[%s2333_s12 + $0x8] sm:$0xff] }
  0xc0   : > { %972 = vmatpush.msra.mxu0 %v351_v12  ;;  %1031 = vmatpush.msra.mxu3 %v547_v15  ;;  %v363_v9 = vld [vmem:[%s2333_s12 + $0x208] sm:$0xff] }
  0xc1   : > { %946 = vmatmul.f32.vlgmr.msrb.gmra.mxu2 %v2493_v16  ;;  %993 = vmatpush.msra.mxu1 %v411_v18  ;;  %v427_v10 = vld [vmem:[%s2333_s12 + $0x408] sm:$0xff] }
  0xc2   : > { %973 = vmatpush.msra.mxu0 %v347_v17  ;;  %1013 = vmatpush.msra.mxu2 %v475_v19  ;;  %v495_v11 = vld [vmem:[%s2333_s12 + $0x628] sm:$0xff] }
  0xc3   : > { %1032 = vmatpush.msra.mxu3 %v543_v20  ;;  %906 = vmatmul.f32.vlgmr.msrb.gmra.mxu0 %v2499_v21  ;;  %v615_v12 = vld [vmem:[%s2333_s12 + $0x9e8] sm:$0xff] }
  0xc4   : > { %966 = vmatmul.f32.vlgmr.msrb.gmra.mxu3 %v2502_v22  ;;  %974 = vmatpush.msra.mxu0 %v343_v23  ;;  %v679_v13 = vld [vmem:[%s2333_s12 + $0xbe8] sm:$0xff] }
  0xc5   : > { %994 = vmatpush.msra.mxu1 %v407_v24  ;;  %1014 = vmatpush.msra.mxu2 %v471_v25  ;;  %v743_v14 = vld [vmem:[%s2333_s12 + $0xde8] sm:$0xff] }
  0xc6   : > { %1033 = vmatpush.msra.mxu3 %v539_v26  ;;  %975 = vmatpush.msra.mxu0 %v339_v28  ;;  %v491_v15 = vld [vmem:[%s2333_s12 + $0x608] sm:$0xff] }
  0xc7   : > { %995 = vmatpush.msra.mxu1 %v403_v29  ;;  %1015 = vmatpush.msra.mxu2 %v467_v30  ;;  %v611_v17 = vld [vmem:[%s2333_s12 + $0x9c8] sm:$0xff] }
  0xc8   : > { %1034 = vmatpush.msra.mxu3 %v535_v31  ;;  %976 = vmatpush.msra.mxu0 %v335_v32  ;;  %v675_v18 = vld [vmem:[%s2333_s12 + $0xbc8] sm:$0xff] }
  0xc9   : > { %996 = vmatpush.msra.mxu1 %v399_v33  ;;  %1016 = vmatpush.msra.mxu2 %v463_v34  ;;  %v739_v19 = vld [vmem:[%s2333_s12 + $0xdc8] sm:$0xff] }
  0xca   : > { %1035 = vmatpush.msra.mxu3 %v531_v35  ;;  %977 = vmatpush.msra.mxu0 %v331_v36  ;;  %v807_v20 = vld [vmem:[%s2333_s12 + $0xfe8] sm:$0xff] }
  0xcb   : > { %997 = vmatpush.msra.mxu1 %v395_v37  ;;  %1017 = vmatpush.msra.mxu2 %v459_v38  ;;  %v607_v23 = vld [vmem:[%s2333_s12 + $0x9a8] sm:$0xff] }
  0xcc   : > { %1036 = vmatpush.msra.mxu3 %v527_v39  ;;  %978 = vmatpush.msra.mxu0 %v327_v40  ;;  %v671_v24 = vld [vmem:[%s2333_s12 + $0xba8] sm:$0xff] }
  0xcd   : > { %998 = vmatpush.msra.mxu1 %v391_v41  ;;  %1018 = vmatpush.msra.mxu2 %v455_v42  ;;  %v735_v25 = vld [vmem:[%s2333_s12 + $0xda8] sm:$0xff] }
  0xce   : > { %1037 = vmatpush.msra.mxu3 %v523_v43  ;;  %979 = vmatpush.msra.mxu0 %v323_v44  ;;  %v803_v26 = vld [vmem:[%s2333_s12 + $0xfc8] sm:$0xff] }
  0xcf   : > { %999 = vmatpush.msra.mxu1 %v387_v45  ;;  %1019 = vmatpush.msra.mxu2 %v451_v46  ;;  %v603_v28 = vld [vmem:[%s2333_s12 + $0x988] sm:$0xff] }
  0xd0   : > { %1038 = vmatpush.msra.mxu3 %v519_v47  ;;  %980 = vmatpush.msra.mxu0 %v319_v48  ;;  %v667_v29 = vld [vmem:[%s2333_s12 + $0xb88] sm:$0xff] }
  0xd1   : > { %1000 = vmatpush.msra.mxu1 %v383_v49  ;;  %1020 = vmatpush.msra.mxu2 %v447_v50  ;;  %v731_v30 = vld [vmem:[%s2333_s12 + $0xd88] sm:$0xff] }
  0xd2   : > { %1039 = vmatpush.msra.mxu3 %v515_v51  ;;  %981 = vmatpush.msra.mxu0 %v315_v52  ;;  %v799_v31 = vld [vmem:[%s2333_s12 + $0xfa8] sm:$0xff] }
  0xd3   : > { %1001 = vmatpush.msra.mxu1 %v379_v53  ;;  %1021 = vmatpush.msra.mxu2 %v443_v54  ;;  %v599_v32 = vld [vmem:[%s2333_s12 + $0x968] sm:$0xff] }
  0xd4   : > { %1040 = vmatpush.msra.mxu3 %v511_v55  ;;  %982 = vmatpush.msra.mxu0 %v311_v56  ;;  %v663_v33 = vld [vmem:[%s2333_s12 + $0xb68] sm:$0xff] }
  0xd5   : > { %1002 = vmatpush.msra.mxu1 %v375_v57  ;;  %1022 = vmatpush.msra.mxu2 %v439_v58  ;;  %v727_v34 = vld [vmem:[%s2333_s12 + $0xd68] sm:$0xff] }
  0xd6   : > { %1041 = vmatpush.msra.mxu3 %v507_v59  ;;  %983 = vmatpush.msra.mxu0 %v307_v61  ;;  %v795_v35 = vld [vmem:[%s2333_s12 + $0xf88] sm:$0xff] }
  0xd7   : > { %1003 = vmatpush.msra.mxu1 %v371_v62  ;;  %1023 = vmatpush.msra.mxu2 %v435_v63  ;;  %v595_v36 = vld [vmem:[%s2333_s12 + $0x948] sm:$0xff] }
  0xd8   : > { %1042 = vmatpush.msra.mxu3 %v503_v0  ;;  %984 = vmatpush.msra.mxu0 %v303_v4  ;;  %v659_v37 = vld [vmem:[%s2333_s12 + $0xb48] sm:$0xff] }
  0xd9   : > { %1004 = vmatpush.msra.mxu1 %v367_v5  ;;  %1024 = vmatpush.msra.mxu2 %v431_v6  ;;  %v723_v38 = vld [vmem:[%s2333_s12 + $0xd48] sm:$0xff] }
  0xda   : > { %1043 = vmatpush.msra.mxu3 %v499_v7  ;;  %985 = vmatpush.msra.mxu0 %v299_v8  ;;  %v791_v39 = vld [vmem:[%s2333_s12 + $0xf68] sm:$0xff] }
  0xdb   : > { %1005 = vmatpush.msra.mxu1 %v363_v9  ;;  %1025 = vmatpush.msra.mxu2 %v427_v10  ;;  %v591_v40 = vld [vmem:[%s2333_s12 + $0x928] sm:$0xff] }
  0xdc   : > { %1044 = vmatpush.msra.mxu3 %v495_v11  ;;  %1050 = vmatpush.msrb.mxu0 %v615_v12  ;;  %v655_v41 = vld [vmem:[%s2333_s12 + $0xb28] sm:$0xff] }
  0xdd   : > { %1070 = vmatpush.msrb.mxu1 %v679_v13  ;;  %1090 = vmatpush.msrb.mxu2 %v743_v14  ;;  %v719_v42 = vld [vmem:[%s2333_s12 + $0xd28] sm:$0xff] }
  0xde   : > { %1045 = vmatpush.msra.mxu3 %v491_v15  ;;  %1051 = vmatpush.msrb.mxu0 %v611_v17  ;;  %v787_v43 = vld [vmem:[%s2333_s12 + $0xf48] sm:$0xff] }
  0xdf   : > { %1071 = vmatpush.msrb.mxu1 %v675_v18  ;;  %1091 = vmatpush.msrb.mxu2 %v739_v19  ;;  %v587_v44 = vld [vmem:[%s2333_s12 + $0x908] sm:$0xff] }
  0xe0   : > { %1110 = vmatpush.msrb.mxu3 %v807_v20  ;;  %1052 = vmatpush.msrb.mxu0 %v607_v23  ;;  %v651_v45 = vld [vmem:[%s2333_s12 + $0xb08] sm:$0xff]  ;;  %v360_v23 = vld [vmem:[%s2333_s12 + $0x1f0] sm:$0xff] }
  0xe1   : > { %1072 = vmatpush.msrb.mxu1 %v671_v24  ;;  %1092 = vmatpush.msrb.mxu2 %v735_v25  ;;  %v715_v46 = vld [vmem:[%s2333_s12 + $0xd08] sm:$0xff]  ;;  %v424_v24 = vld [vmem:[%s2333_s12 + $0x3f0] sm:$0xff] }
  0xe2   : > { %1111 = vmatpush.msrb.mxu3 %v803_v26  ;;  %1053 = vmatpush.msrb.mxu0 %v603_v28  ;;  %v783_v47 = vld [vmem:[%s2333_s12 + $0xf28] sm:$0xff]  ;;  %v488_v25 = vld [vmem:[%s2333_s12 + $0x5f0] sm:$0xff] }
  0xe3   : > { %1073 = vmatpush.msrb.mxu1 %v667_v29  ;;  %1093 = vmatpush.msrb.mxu2 %v731_v30  ;;  %v583_v48 = vld [vmem:[%s2333_s12 + $0x8e8] sm:$0xff]  ;;  %v420_v28 = vld [vmem:[%s2333_s12 + $0x3d0] sm:$0xff] }
  0xe4   : > { %1112 = vmatpush.msrb.mxu3 %v799_v31  ;;  %1054 = vmatpush.msrb.mxu0 %v599_v32  ;;  %v647_v49 = vld [vmem:[%s2333_s12 + $0xae8] sm:$0xff]  ;;  %v484_v29 = vld [vmem:[%s2333_s12 + $0x5d0] sm:$0xff] }
  0xe5   : > { %1074 = vmatpush.msrb.mxu1 %v663_v33  ;;  %1094 = vmatpush.msrb.mxu2 %v727_v34  ;;  %v711_v50 = vld [vmem:[%s2333_s12 + $0xce8] sm:$0xff]  ;;  %v552_v30 = vld [vmem:[%s2333_s12 + $0x7f0] sm:$0xff] }
  0xe6   : > { %1113 = vmatpush.msrb.mxu3 %v795_v35  ;;  %1055 = vmatpush.msrb.mxu0 %v595_v36  ;;  %v779_v51 = vld [vmem:[%s2333_s12 + $0xf08] sm:$0xff]  ;;  %v416_v31 = vld [vmem:[%s2333_s12 + $0x3b0] sm:$0xff] }
  0xe7   : > { %1075 = vmatpush.msrb.mxu1 %v659_v37  ;;  %1095 = vmatpush.msrb.mxu2 %v723_v38  ;;  %v579_v52 = vld [vmem:[%s2333_s12 + $0x8c8] sm:$0xff]  ;;  %v548_v32 = vld [vmem:[%s2333_s12 + $0x7d0] sm:$0xff] }
  0xe8   : > { %1114 = vmatpush.msrb.mxu3 %v791_v39  ;;  %1056 = vmatpush.msrb.mxu0 %v591_v40  ;;  %v643_v53 = vld [vmem:[%s2333_s12 + $0xac8] sm:$0xff]  ;;  %v412_v33 = vld [vmem:[%s2333_s12 + $0x390] sm:$0xff] }
  0xe9   : > { %1076 = vmatpush.msrb.mxu1 %v655_v41  ;;  %1096 = vmatpush.msrb.mxu2 %v719_v42  ;;  %v707_v54 = vld [vmem:[%s2333_s12 + $0xcc8] sm:$0xff]  ;;  %v476_v34 = vld [vmem:[%s2333_s12 + $0x590] sm:$0xff] }
  0xea   : > { %1115 = vmatpush.msrb.mxu3 %v787_v43  ;;  %1057 = vmatpush.msrb.mxu0 %v587_v44  ;;  %v775_v55 = vld [vmem:[%s2333_s12 + $0xee8] sm:$0xff]  ;;  %v544_v35 = vld [vmem:[%s2333_s12 + $0x7b0] sm:$0xff] }
  0xeb   : > { %1077 = vmatpush.msrb.mxu1 %v651_v45  ;;  %1097 = vmatpush.msrb.mxu2 %v715_v46  ;;  %v575_v56 = vld [vmem:[%s2333_s12 + $0x8a8] sm:$0xff]  ;;  %v344_v36 = vld [vmem:[%s2333_s12 + $0x170] sm:$0xff] }
  0xec   : > { %1116 = vmatpush.msrb.mxu3 %v783_v47  ;;  %1058 = vmatpush.msrb.mxu0 %v583_v48  ;;  %v639_v57 = vld [vmem:[%s2333_s12 + $0xaa8] sm:$0xff]  ;;  %v408_v37 = vld [vmem:[%s2333_s12 + $0x370] sm:$0xff] }
  0xed   : > { %1078 = vmatpush.msrb.mxu1 %v647_v49  ;;  %1098 = vmatpush.msrb.mxu2 %v711_v50  ;;  %v703_v58 = vld [vmem:[%s2333_s12 + $0xca8] sm:$0xff]  ;;  %v472_v38 = vld [vmem:[%s2333_s12 + $0x570] sm:$0xff] }
  0xee   : > { %1117 = vmatpush.msrb.mxu3 %v779_v51  ;;  %1059 = vmatpush.msrb.mxu0 %v579_v52  ;;  %v771_v59 = vld [vmem:[%s2333_s12 + $0xec8] sm:$0xff]  ;;  %v540_v39 = vld [vmem:[%s2333_s12 + $0x790] sm:$0xff] }
  0xef   : > { %1079 = vmatpush.msrb.mxu1 %v643_v53  ;;  %1099 = vmatpush.msrb.mxu2 %v707_v54  ;;  %v571_v61 = vld [vmem:[%s2333_s12 + $0x888] sm:$0xff]  ;;  %v404_v40 = vld [vmem:[%s2333_s12 + $0x350] sm:$0xff] }
  0xf0   : > { %1118 = vmatpush.msrb.mxu3 %v775_v55  ;;  %v635_v62 = vld [vmem:[%s2333_s12 + $0xa88] sm:$0xff]  ;;  %1060 = vmatpush.msrb.mxu0 %v575_v56  ;;  %v468_v41 = vld [vmem:[%s2333_s12 + $0x550] sm:$0xff] }
  0xf1   : > { %1080 = vmatpush.msrb.mxu1 %v639_v57  ;;  %v699_v63 = vld [vmem:[%s2333_s12 + $0xc88] sm:$0xff]  ;;  %1100 = vmatpush.msrb.mxu2 %v703_v58  ;;  %v536_v42 = vld [vmem:[%s2333_s12 + $0x770] sm:$0xff] }
  0xf2   : > { %v767_v0 = vld [vmem:[%s2333_s12 + $0xea8] sm:$0xff]  ;;  %1119 = vmatpush.msrb.mxu3 %v771_v59  ;;  %1061 = vmatpush.msrb.mxu0 %v571_v61  ;;  %v400_v43 = vld [vmem:[%s2333_s12 + $0x330] sm:$0xff] }
  0xf3   : > { %v567_v4 = vld [vmem:[%s2333_s12 + $0x868] sm:$0xff]  ;;  %1081 = vmatpush.msrb.mxu1 %v635_v62  ;;  %1101 = vmatpush.msrb.mxu2 %v699_v63  ;;  %v532_v44 = vld [vmem:[%s2333_s12 + $0x750] sm:$0xff] }
  0xf4   : > { %v631_v5 = vld [vmem:[%s2333_s12 + $0xa68] sm:$0xff]  ;;  %1120 = vmatpush.msrb.mxu3 %v767_v0  ;;  %1062 = vmatpush.msrb.mxu0 %v567_v4  ;;  %v332_v45 = vld [vmem:[%s2333_s12 + $0x110] sm:$0xff] }
  0xf5   : > { %v695_v6 = vld [vmem:[%s2333_s12 + $0xc68] sm:$0xff]  ;;  %1082 = vmatpush.msrb.mxu1 %v631_v5  ;;  %1026 = vmatmul.f32.vlgmr.msra.gmra.mxu2 %v2465_v60  ;;  %v356_v60 = vld [vmem:[%s2333_s12 + $0x1d0] sm:$0xff] }
  0xf6   : > { %v763_v7 = vld [vmem:[%s2333_s12 + $0xe88] sm:$0xff]  ;;  %1102 = vmatpush.msrb.mxu2 %v695_v6  ;;  %986 = vmatmul.f32.vlgmr.msra.gmra.mxu0 %v2471_v1  ;;  %v352_v1 = vld [vmem:[%s2333_s12 + $0x1b0] sm:$0xff] }
  0xf7   : > { %v563_v8 = vld [vmem:[%s2333_s12 + $0x848] sm:$0xff]  ;;  %1121 = vmatpush.msrb.mxu3 %v763_v7  ;;  %1006 = vmatmul.f32.vlgmr.msra.gmra.mxu1 %v2474_v2  ;;  %v480_v2 = vld [vmem:[%s2333_s12 + $0x5b0] sm:$0xff] }
  0xf8   : > { %v627_v9 = vld [vmem:[%s2333_s12 + $0xa48] sm:$0xff]  ;;  %1063 = vmatpush.msrb.mxu0 %v563_v8  ;;  %1046 = vmatmul.f32.vlgmr.msra.gmra.mxu3 %v2476_v3  ;;  %v348_v3 = vld [vmem:[%s2333_s12 + $0x190] sm:$0xff] }
  0xf9   : > { %v691_v10 = vld [vmem:[%s2333_s12 + $0xc48] sm:$0xff]  ;;  %1083 = vmatpush.msrb.mxu1 %v627_v9  ;;  %v396_v46 = vld [vmem:[%s2333_s12 + $0x310] sm:$0xff] }
  0xfa   : > { %v759_v11 = vld [vmem:[%s2333_s12 + $0xe68] sm:$0xff]  ;;  %1103 = vmatpush.msrb.mxu2 %v691_v10  ;;  %v460_v47 = vld [vmem:[%s2333_s12 + $0x510] sm:$0xff] }
  0xfb   : > { %v559_v12 = vld [vmem:[%s2333_s12 + $0x828] sm:$0xff]  ;;  %1122 = vmatpush.msrb.mxu3 %v759_v11  ;;  %v328_v48 = vld [vmem:[%s2333_s12 + $0xf0] sm:$0xff] }
  0xfc   : > { %v623_v13 = vld [vmem:[%s2333_s12 + $0xa28] sm:$0xff]  ;;  %1064 = vmatpush.msrb.mxu0 %v559_v12  ;;  %v392_v49 = vld [vmem:[%s2333_s12 + $0x2f0] sm:$0xff] }
  0xfd   : > { %v687_v14 = vld [vmem:[%s2333_s12 + $0xc28] sm:$0xff]  ;;  %1084 = vmatpush.msrb.mxu1 %v623_v13  ;;  %v456_v50 = vld [vmem:[%s2333_s12 + $0x4f0] sm:$0xff] }
  0xfe   : > { %v755_v15 = vld [vmem:[%s2333_s12 + $0xe48] sm:$0xff]  ;;  %1104 = vmatpush.msrb.mxu2 %v687_v14  ;;  %v524_v51 = vld [vmem:[%s2333_s12 + $0x710] sm:$0xff] }
  0xff   : > { %v555_v17 = vld [vmem:[%s2333_s12 + $0x808] sm:$0xff]  ;;  %1123 = vmatpush.msrb.mxu3 %v755_v15  ;;  %v324_v52 = vld [vmem:[%s2333_s12 + $0xd0] sm:$0xff] }
 0x100   : > { %v619_v18 = vld [vmem:[%s2333_s12 + $0xa08] sm:$0xff]  ;;  %1065 = vmatpush.msrb.mxu0 %v555_v17  ;;  %v388_v53 = vld [vmem:[%s2333_s12 + $0x2d0] sm:$0xff] }
 0x101   : > { %v683_v19 = vld [vmem:[%s2333_s12 + $0xc08] sm:$0xff]  ;;  %1085 = vmatpush.msrb.mxu1 %v619_v18  ;;  %1066 = vmatmul.f32.vlgmr.msrb.gmra.mxu0 %v2499_v21  ;;  %v336_v21 = vld [vmem:[%s2333_s12 + $0x130] sm:$0xff] }
 0x102   : > { %v751_v20 = vld [vmem:[%s2333_s12 + $0xe28] sm:$0xff]  ;;  %1105 = vmatpush.msrb.mxu2 %v683_v19  ;;  %1130 = vmatpush.msra.mxu0 %v360_v23  ;;  %v452_v54 = vld [vmem:[%s2333_s12 + $0x4d0] sm:$0xff] }
 0x103   : > { %1124 = vmatpush.msrb.mxu3 %v751_v20  ;;  %v747_v26 = vld [vmem:[%s2333_s12 + $0xe08] sm:$0xff]  ;;  %1150 = vmatpush.msra.mxu1 %v424_v24  ;;  %v520_v55 = vld [vmem:[%s2333_s12 + $0x6f0] sm:$0xff] }
 0x104   : > { %1170 = vmatpush.msra.mxu2 %v488_v25  ;;  %1131 = vmatpush.msra.mxu0 %v356_v60  ;;  %v320_v56 = vld [vmem:[%s2333_s12 + $0xb0] sm:$0xff] }
 0x105   : > { %1125 = vmatpush.msrb.mxu3 %v747_v26  ;;  %1151 = vmatpush.msra.mxu1 %v420_v28  ;;  %v384_v57 = vld [vmem:[%s2333_s12 + $0x2b0] sm:$0xff] }
 0x106   : > { %1171 = vmatpush.msra.mxu2 %v484_v29  ;;  %1132 = vmatpush.msra.mxu0 %v352_v1  ;;  %v448_v58 = vld [vmem:[%s2333_s12 + $0x4b0] sm:$0xff] }
 0x107   : > { %1190 = vmatpush.msra.mxu3 %v552_v30  ;;  %1152 = vmatpush.msra.mxu1 %v416_v31  ;;  %v516_v59 = vld [vmem:[%s2333_s12 + $0x6d0] sm:$0xff] }
 0x108   : > { %1172 = vmatpush.msra.mxu2 %v480_v2  ;;  %1133 = vmatpush.msra.mxu0 %v348_v3  ;;  %v316_v61 = vld [vmem:[%s2333_s12 + $0x90] sm:$0xff] }
 0x109   : > { %1191 = vmatpush.msra.mxu3 %v548_v32  ;;  %1106 = vmatmul.f32.vlgmr.msrb.gmra.mxu2 %v2493_v16  ;;  %v340_v16 = vld [vmem:[%s2333_s12 + $0x150] sm:$0xff] }
 0x10a   : > { %1153 = vmatpush.msra.mxu1 %v412_v33  ;;  %1173 = vmatpush.msra.mxu2 %v476_v34  ;;  %v380_v62 = vld [vmem:[%s2333_s12 + $0x290] sm:$0xff] }
 0x10b   : > { %1192 = vmatpush.msra.mxu3 %v544_v35  ;;  %1134 = vmatpush.msra.mxu0 %v344_v36  ;;  %v444_v63 = vld [vmem:[%s2333_s12 + $0x490] sm:$0xff] }
 0x10c   : > { %1126 = vmatmul.f32.vlgmr.msrb.gmra.mxu3 %v2502_v22  ;;  %1154 = vmatpush.msra.mxu1 %v408_v37  ;;  %v464_v22 = vld [vmem:[%s2333_s12 + $0x530] sm:$0xff] }
 0x10d   : > { %1174 = vmatpush.msra.mxu2 %v472_v38  ;;  %1193 = vmatpush.msra.mxu3 %v540_v39  ;;  %v512_v0 = vld [vmem:[%s2333_s12 + $0x6b0] sm:$0xff] }
 0x10e   : > { %1086 = vmatmul.f32.vlgmr.msrb.gmra.mxu1 %v2509_v27  ;;  %1135 = vmatpush.msra.mxu0 %v340_v16  ;;  %v528_v27 = vld [vmem:[%s2333_s12 + $0x730] sm:$0xff] }
 0x10f   : > { %1155 = vmatpush.msra.mxu1 %v404_v40  ;;  %1175 = vmatpush.msra.mxu2 %v468_v41  ;;  %v312_v4 = vld [vmem:[%s2333_s12 + $0x70] sm:$0xff] }
 0x110   : > { %1194 = vmatpush.msra.mxu3 %v536_v42  ;;  %1136 = vmatpush.msra.mxu0 %v336_v21  ;;  %v376_v5 = vld [vmem:[%s2333_s12 + $0x270] sm:$0xff] }
 0x111   : > { %1156 = vmatpush.msra.mxu1 %v400_v43  ;;  %1176 = vmatpush.msra.mxu2 %v464_v22  ;;  %v440_v6 = vld [vmem:[%s2333_s12 + $0x470] sm:$0xff] }
 0x112   : > { %1195 = vmatpush.msra.mxu3 %v532_v44  ;;  %1137 = vmatpush.msra.mxu0 %v332_v45  ;;  %v508_v7 = vld [vmem:[%s2333_s12 + $0x690] sm:$0xff] }
 0x113   : > { %1157 = vmatpush.msra.mxu1 %v396_v46  ;;  %1177 = vmatpush.msra.mxu2 %v460_v47  ;;  %v308_v8 = vld [vmem:[%s2333_s12 + $0x50] sm:$0xff] }
 0x114   : > { %1196 = vmatpush.msra.mxu3 %v528_v27  ;;  %1138 = vmatpush.msra.mxu0 %v328_v48  ;;  %v372_v9 = vld [vmem:[%s2333_s12 + $0x250] sm:$0xff] }
 0x115   : > { %1158 = vmatpush.msra.mxu1 %v392_v49  ;;  %1178 = vmatpush.msra.mxu2 %v456_v50  ;;  %v436_v10 = vld [vmem:[%s2333_s12 + $0x450] sm:$0xff] }
 0x116   : > { %1197 = vmatpush.msra.mxu3 %v524_v51  ;;  %1139 = vmatpush.msra.mxu0 %v324_v52  ;;  %v504_v11 = vld [vmem:[%s2333_s12 + $0x670] sm:$0xff] }
 0x117   : > { %1159 = vmatpush.msra.mxu1 %v388_v53  ;;  %1179 = vmatpush.msra.mxu2 %v452_v54  ;;  %v304_v12 = vld [vmem:[%s2333_s12 + $0x30] sm:$0xff] }
 0x118   : > { %1198 = vmatpush.msra.mxu3 %v520_v55  ;;  %1140 = vmatpush.msra.mxu0 %v320_v56  ;;  %v368_v13 = vld [vmem:[%s2333_s12 + $0x230] sm:$0xff] }
 0x119   : > { %1160 = vmatpush.msra.mxu1 %v384_v57  ;;  %1180 = vmatpush.msra.mxu2 %v448_v58  ;;  %v432_v14 = vld [vmem:[%s2333_s12 + $0x430] sm:$0xff] }
 0x11a   : > { %1199 = vmatpush.msra.mxu3 %v516_v59  ;;  %1141 = vmatpush.msra.mxu0 %v316_v61  ;;  %v500_v15 = vld [vmem:[%s2333_s12 + $0x650] sm:$0xff] }
 0x11b   : > { %1161 = vmatpush.msra.mxu1 %v380_v62  ;;  %1181 = vmatpush.msra.mxu2 %v444_v63  ;;  %v300_v17 = vld [vmem:[%s2333_s12 + $0x10] sm:$0xff] }
 0x11c   : > { %1200 = vmatpush.msra.mxu3 %v512_v0  ;;  %1142 = vmatpush.msra.mxu0 %v312_v4  ;;  %v364_v18 = vld [vmem:[%s2333_s12 + $0x210] sm:$0xff] }
 0x11d   : > { %1162 = vmatpush.msra.mxu1 %v376_v5  ;;  %1182 = vmatpush.msra.mxu2 %v440_v6  ;;  %v428_v19 = vld [vmem:[%s2333_s12 + $0x410] sm:$0xff] }
 0x11e   : > { %1201 = vmatpush.msra.mxu3 %v508_v7  ;;  %1143 = vmatpush.msra.mxu0 %v308_v8  ;;  %v496_v20 = vld [vmem:[%s2333_s12 + $0x630] sm:$0xff] }
 0x11f   : > { %1163 = vmatpush.msra.mxu1 %v372_v9  ;;  %1183 = vmatpush.msra.mxu2 %v436_v10  ;;  %v616_v23 = vld [vmem:[%s2333_s12 + $0x9f0] sm:$0xff] }
 0x120   : > { %1202 = vmatpush.msra.mxu3 %v504_v11  ;;  %1144 = vmatpush.msra.mxu0 %v304_v12  ;;  %v680_v24 = vld [vmem:[%s2333_s12 + $0xbf0] sm:$0xff]  ;;  %v2751_v12 = vld [vmem:[#allocation2] sm:$0xff] }
 0x121   : > { %1164 = vmatpush.msra.mxu1 %v368_v13  ;;  %1184 = vmatpush.msra.mxu2 %v432_v14  ;;  %v744_v25 = vld [vmem:[%s2333_s12 + $0xdf0] sm:$0xff]  ;;  %v2755_v14 = vld [vmem:[#allocation2 + $0x18] sm:$0xff] }
 0x122   : > { %1203 = vmatpush.msra.mxu3 %v500_v15  ;;  %1145 = vmatpush.msra.mxu0 %v300_v17  ;;  %v492_v26 = vld [vmem:[%s2333_s12 + $0x610] sm:$0xff] }
 0x123   : > { %1165 = vmatpush.msra.mxu1 %v364_v18  ;;  %1185 = vmatpush.msra.mxu2 %v428_v19  ;;  %v612_v60 = vld [vmem:[%s2333_s12 + $0x9d0] sm:$0xff] }
 0x124   : > { %1204 = vmatpush.msra.mxu3 %v496_v20  ;;  %v676_v28 = vld [vmem:[%s2333_s12 + $0xbd0] sm:$0xff]  ;;  %1210 = vmatpush.msrb.mxu0 %v616_v23  ;;  %v2762_v20 = vld [vmem:[#allocation2 + $0x8] sm:$0xff] }
 0x125   : > { %1230 = vmatpush.msrb.mxu1 %v680_v24  ;;  %v740_v29 = vld [vmem:[%s2333_s12 + $0xdd0] sm:$0xff]  ;;  %1250 = vmatpush.msrb.mxu2 %v744_v25 }
 0x126   : > { %v808_v30 = vld [vmem:[%s2333_s12 + $0xff0] sm:$0xff]  ;;  %1205 = vmatpush.msra.mxu3 %v492_v26  ;;  %1211 = vmatpush.msrb.mxu0 %v612_v60  ;;  %v361_v60 = vld [vmem:[%s2333_s12 + $0x1f8] sm:$0xff] }
 0x127   : > { %v608_v1 = vld [vmem:[%s2333_s12 + $0x9b0] sm:$0xff]  ;;  %1231 = vmatpush.msrb.mxu1 %v676_v28  ;;  %1251 = vmatpush.msrb.mxu2 %v740_v29  ;;  %v425_v28 = vld [vmem:[%s2333_s12 + $0x3f8] sm:$0xff] }
 0x128   : > { %v672_v31 = vld [vmem:[%s2333_s12 + $0xbb0] sm:$0xff]  ;;  %1270 = vmatpush.msrb.mxu3 %v808_v30  ;;  %1212 = vmatpush.msrb.mxu0 %v608_v1  ;;  %v489_v29 = vld [vmem:[%s2333_s12 + $0x5f8] sm:$0xff] }
 0x129   : > { %v736_v2 = vld [vmem:[%s2333_s12 + $0xdb0] sm:$0xff]  ;;  %1232 = vmatpush.msrb.mxu1 %v672_v31  ;;  %1146 = vmatmul.f32.vlgmr.msra.gmra.mxu0 %v2751_v12  ;;  %v357_v31 = vld [vmem:[%s2333_s12 + $0x1d8] sm:$0xff] }
 0x12a   : > { %v804_v32 = vld [vmem:[%s2333_s12 + $0xfd0] sm:$0xff]  ;;  %1252 = vmatpush.msrb.mxu2 %v736_v2  ;;  %1206 = vmatmul.f32.vlgmr.msra.gmra.mxu3 %v2755_v14  ;;  %v421_v2 = vld [vmem:[%s2333_s12 + $0x3d8] sm:$0xff] }
 0x12b   : > { %v604_v3 = vld [vmem:[%s2333_s12 + $0x990] sm:$0xff]  ;;  %1271 = vmatpush.msrb.mxu3 %v804_v32  ;;  %1166 = vmatmul.f32.vlgmr.msra.gmra.mxu1 %v2762_v20  ;;  %v485_v32 = vld [vmem:[%s2333_s12 + $0x5d8] sm:$0xff] }
 0x12c   : > { %v668_v33 = vld [vmem:[%s2333_s12 + $0xb90] sm:$0xff]  ;;  %1213 = vmatpush.msrb.mxu0 %v604_v3  ;;  %v2779_v3 = vld [vmem:[#allocation2 + $0x20] sm:$0xff] }
 0x12d   : > { %v732_v34 = vld [vmem:[%s2333_s12 + $0xd90] sm:$0xff]  ;;  %1233 = vmatpush.msrb.mxu1 %v668_v33  ;;  %v553_v33 = vld [vmem:[%s2333_s12 + $0x7f8] sm:$0xff] }
 0x12e   : > { %v800_v35 = vld [vmem:[%s2333_s12 + $0xfb0] sm:$0xff]  ;;  %1253 = vmatpush.msrb.mxu2 %v732_v34  ;;  %v2783_v34 = vld [vmem:[#allocation2 + $0x38] sm:$0xff] }
 0x12f   : > { %v600_v36 = vld [vmem:[%s2333_s12 + $0x970] sm:$0xff]  ;;  %1272 = vmatpush.msrb.mxu3 %v800_v35  ;;  %v353_v35 = vld [vmem:[%s2333_s12 + $0x1b8] sm:$0xff] }
 0x130   : > { %v664_v37 = vld [vmem:[%s2333_s12 + $0xb70] sm:$0xff]  ;;  %1214 = vmatpush.msrb.mxu0 %v600_v36  ;;  %v417_v36 = vld [vmem:[%s2333_s12 + $0x3b8] sm:$0xff] }
 0x131   : > { %v728_v38 = vld [vmem:[%s2333_s12 + $0xd70] sm:$0xff]  ;;  %1234 = vmatpush.msrb.mxu1 %v664_v37  ;;  %v481_v37 = vld [vmem:[%s2333_s12 + $0x5b8] sm:$0xff] }
 0x132   : > { %v796_v39 = vld [vmem:[%s2333_s12 + $0xf90] sm:$0xff]  ;;  %1254 = vmatpush.msrb.mxu2 %v728_v38  ;;  %v549_v38 = vld [vmem:[%s2333_s12 + $0x7d8] sm:$0xff] }
 0x133   : > { %v596_v16 = vld [vmem:[%s2333_s12 + $0x950] sm:$0xff]  ;;  %1273 = vmatpush.msrb.mxu3 %v796_v39  ;;  %v2790_v39 = vld [vmem:[#allocation2 + $0x28] sm:$0xff] }
 0x134   : > { %v660_v40 = vld [vmem:[%s2333_s12 + $0xb50] sm:$0xff]  ;;  %1215 = vmatpush.msrb.mxu0 %v596_v16  ;;  %v349_v16 = vld [vmem:[%s2333_s12 + $0x198] sm:$0xff] }
 0x135   : > { %v724_v41 = vld [vmem:[%s2333_s12 + $0xd50] sm:$0xff]  ;;  %1235 = vmatpush.msrb.mxu1 %v660_v40  ;;  %v413_v40 = vld [vmem:[%s2333_s12 + $0x398] sm:$0xff] }
 0x136   : > { %v792_v42 = vld [vmem:[%s2333_s12 + $0xf70] sm:$0xff]  ;;  %1255 = vmatpush.msrb.mxu2 %v724_v41  ;;  %v477_v41 = vld [vmem:[%s2333_s12 + $0x598] sm:$0xff] }
 0x137   : > { %v592_v21 = vld [vmem:[%s2333_s12 + $0x930] sm:$0xff]  ;;  %1274 = vmatpush.msrb.mxu3 %v792_v42  ;;  %v545_v42 = vld [vmem:[%s2333_s12 + $0x7b8] sm:$0xff] }
 0x138   : > { %v656_v43 = vld [vmem:[%s2333_s12 + $0xb30] sm:$0xff]  ;;  %1216 = vmatpush.msrb.mxu0 %v592_v21  ;;  %v345_v21 = vld [vmem:[%s2333_s12 + $0x178] sm:$0xff] }
 0x139   : > { %v720_v22 = vld [vmem:[%s2333_s12 + $0xd30] sm:$0xff]  ;;  %1236 = vmatpush.msrb.mxu1 %v656_v43  ;;  %v409_v43 = vld [vmem:[%s2333_s12 + $0x378] sm:$0xff] }
 0x13a   : > { %v788_v44 = vld [vmem:[%s2333_s12 + $0xf50] sm:$0xff]  ;;  %1256 = vmatpush.msrb.mxu2 %v720_v22  ;;  %v473_v22 = vld [vmem:[%s2333_s12 + $0x578] sm:$0xff] }
 0x13b   : > { %v588_v45 = vld [vmem:[%s2333_s12 + $0x910] sm:$0xff]  ;;  %1275 = vmatpush.msrb.mxu3 %v788_v44  ;;  %v541_v44 = vld [vmem:[%s2333_s12 + $0x798] sm:$0xff] }
 0x13c   : > { %v652_v46 = vld [vmem:[%s2333_s12 + $0xb10] sm:$0xff]  ;;  %1217 = vmatpush.msrb.mxu0 %v588_v45  ;;  %v341_v45 = vld [vmem:[%s2333_s12 + $0x158] sm:$0xff] }
 0x13d   : > { %v716_v47 = vld [vmem:[%s2333_s12 + $0xd10] sm:$0xff]  ;;  %1237 = vmatpush.msrb.mxu1 %v652_v46  ;;  %v405_v46 = vld [vmem:[%s2333_s12 + $0x358] sm:$0xff] }
 0x13e   : > { %v784_v27 = vld [vmem:[%s2333_s12 + $0xf30] sm:$0xff]  ;;  %1257 = vmatpush.msrb.mxu2 %v716_v47  ;;  %v469_v47 = vld [vmem:[%s2333_s12 + $0x558] sm:$0xff] }
 0x13f   : > { %v584_v48 = vld [vmem:[%s2333_s12 + $0x8f0] sm:$0xff]  ;;  %1276 = vmatpush.msrb.mxu3 %v784_v27  ;;  %v537_v27 = vld [vmem:[%s2333_s12 + $0x778] sm:$0xff] }
 0x140   : > { %v648_v49 = vld [vmem:[%s2333_s12 + $0xaf0] sm:$0xff]  ;;  %1218 = vmatpush.msrb.mxu0 %v584_v48  ;;  %v337_v48 = vld [vmem:[%s2333_s12 + $0x138] sm:$0xff] }
 0x141   : > { %v712_v50 = vld [vmem:[%s2333_s12 + $0xcf0] sm:$0xff]  ;;  %1238 = vmatpush.msrb.mxu1 %v648_v49  ;;  %v401_v49 = vld [vmem:[%s2333_s12 + $0x338] sm:$0xff] }
 0x142   : > { %v780_v51 = vld [vmem:[%s2333_s12 + $0xf10] sm:$0xff]  ;;  %1258 = vmatpush.msrb.mxu2 %v712_v50  ;;  %v465_v50 = vld [vmem:[%s2333_s12 + $0x538] sm:$0xff] }
 0x143   : > { %v580_v52 = vld [vmem:[%s2333_s12 + $0x8d0] sm:$0xff]  ;;  %1277 = vmatpush.msrb.mxu3 %v780_v51  ;;  %v533_v51 = vld [vmem:[%s2333_s12 + $0x758] sm:$0xff] }
 0x144   : > { %v644_v53 = vld [vmem:[%s2333_s12 + $0xad0] sm:$0xff]  ;;  %1219 = vmatpush.msrb.mxu0 %v580_v52  ;;  %v333_v52 = vld [vmem:[%s2333_s12 + $0x118] sm:$0xff] }
 0x145   : > { %v708_v54 = vld [vmem:[%s2333_s12 + $0xcd0] sm:$0xff]  ;;  %1239 = vmatpush.msrb.mxu1 %v644_v53  ;;  %v397_v53 = vld [vmem:[%s2333_s12 + $0x318] sm:$0xff] }
 0x146   : > { %v776_v55 = vld [vmem:[%s2333_s12 + $0xef0] sm:$0xff]  ;;  %1259 = vmatpush.msrb.mxu2 %v708_v54  ;;  %v461_v54 = vld [vmem:[%s2333_s12 + $0x518] sm:$0xff] }
 0x147   : > { %v576_v56 = vld [vmem:[%s2333_s12 + $0x8b0] sm:$0xff]  ;;  %1278 = vmatpush.msrb.mxu3 %v776_v55  ;;  %v529_v55 = vld [vmem:[%s2333_s12 + $0x738] sm:$0xff] }
 0x148   : > { %v640_v57 = vld [vmem:[%s2333_s12 + $0xab0] sm:$0xff]  ;;  %1220 = vmatpush.msrb.mxu0 %v576_v56  ;;  %v329_v56 = vld [vmem:[%s2333_s12 + $0xf8] sm:$0xff] }
 0x149   : > { %v704_v58 = vld [vmem:[%s2333_s12 + $0xcb0] sm:$0xff]  ;;  %1240 = vmatpush.msrb.mxu1 %v640_v57  ;;  %v393_v57 = vld [vmem:[%s2333_s12 + $0x2f8] sm:$0xff] }
 0x14a   : > { %v772_v59 = vld [vmem:[%s2333_s12 + $0xed0] sm:$0xff]  ;;  %1260 = vmatpush.msrb.mxu2 %v704_v58  ;;  %v457_v58 = vld [vmem:[%s2333_s12 + $0x4f8] sm:$0xff] }
 0x14b   : > { %v572_v61 = vld [vmem:[%s2333_s12 + $0x890] sm:$0xff]  ;;  %1279 = vmatpush.msrb.mxu3 %v772_v59  ;;  %v525_v59 = vld [vmem:[%s2333_s12 + $0x718] sm:$0xff] }
 0x14c   : > { %v636_v62 = vld [vmem:[%s2333_s12 + $0xa90] sm:$0xff]  ;;  %1221 = vmatpush.msrb.mxu0 %v572_v61  ;;  %v325_v61 = vld [vmem:[%s2333_s12 + $0xd8] sm:$0xff] }
 0x14d   : > { %v700_v63 = vld [vmem:[%s2333_s12 + $0xc90] sm:$0xff]  ;;  %1241 = vmatpush.msrb.mxu1 %v636_v62  ;;  %v389_v62 = vld [vmem:[%s2333_s12 + $0x2d8] sm:$0xff] }
 0x14e   : > { %v768_v0 = vld [vmem:[%s2333_s12 + $0xeb0] sm:$0xff]  ;;  %1261 = vmatpush.msrb.mxu2 %v700_v63  ;;  %v453_v63 = vld [vmem:[%s2333_s12 + $0x4d8] sm:$0xff] }
 0x14f   : > { %v568_v4 = vld [vmem:[%s2333_s12 + $0x870] sm:$0xff]  ;;  %1280 = vmatpush.msrb.mxu3 %v768_v0  ;;  %v521_v0 = vld [vmem:[%s2333_s12 + $0x6f8] sm:$0xff] }
 0x150   : > { %v632_v5 = vld [vmem:[%s2333_s12 + $0xa70] sm:$0xff]  ;;  %1222 = vmatpush.msrb.mxu0 %v568_v4  ;;  %v321_v4 = vld [vmem:[%s2333_s12 + $0xb8] sm:$0xff] }
 0x151   : > { %v696_v6 = vld [vmem:[%s2333_s12 + $0xc70] sm:$0xff]  ;;  %1242 = vmatpush.msrb.mxu1 %v632_v5  ;;  %v385_v5 = vld [vmem:[%s2333_s12 + $0x2b8] sm:$0xff] }
 0x152   : > { %v764_v7 = vld [vmem:[%s2333_s12 + $0xe90] sm:$0xff]  ;;  %1262 = vmatpush.msrb.mxu2 %v696_v6  ;;  %v449_v6 = vld [vmem:[%s2333_s12 + $0x4b8] sm:$0xff] }
 0x153   : > { %v2745_v8 = vld [vmem:[#allocation2 + $0x10] sm:$0xff]  ;;  %1281 = vmatpush.msrb.mxu3 %v764_v7  ;;  %v517_v7 = vld [vmem:[%s2333_s12 + $0x6d8] sm:$0xff] }
 0x154   : > { %1186 = vmatmul.f32.vlgmr.msra.gmra.mxu2 %v2745_v8  ;;  %v564_v9 = vld [vmem:[%s2333_s12 + $0x850] sm:$0xff] }
 0x155   : > { %v628_v10 = vld [vmem:[%s2333_s12 + $0xa50] sm:$0xff]  ;;  %1223 = vmatpush.msrb.mxu0 %v564_v9  ;;  %v317_v9 = vld [vmem:[%s2333_s12 + $0x98] sm:$0xff] }
 0x156   : > { %v692_v11 = vld [vmem:[%s2333_s12 + $0xc50] sm:$0xff]  ;;  %1243 = vmatpush.msrb.mxu1 %v628_v10  ;;  %v381_v10 = vld [vmem:[%s2333_s12 + $0x298] sm:$0xff] }
 0x157   : > { %v760_v13 = vld [vmem:[%s2333_s12 + $0xe70] sm:$0xff]  ;;  %1263 = vmatpush.msrb.mxu2 %v692_v11  ;;  %v445_v11 = vld [vmem:[%s2333_s12 + $0x498] sm:$0xff] }
 0x158   : > { %v560_v15 = vld [vmem:[%s2333_s12 + $0x830] sm:$0xff]  ;;  %1282 = vmatpush.msrb.mxu3 %v760_v13  ;;  %v513_v13 = vld [vmem:[%s2333_s12 + $0x6b8] sm:$0xff] }
 0x159   : > { %v624_v17 = vld [vmem:[%s2333_s12 + $0xa30] sm:$0xff]  ;;  %1224 = vmatpush.msrb.mxu0 %v560_v15  ;;  %v313_v15 = vld [vmem:[%s2333_s12 + $0x78] sm:$0xff] }
 0x15a   : > { %v688_v18 = vld [vmem:[%s2333_s12 + $0xc30] sm:$0xff]  ;;  %1244 = vmatpush.msrb.mxu1 %v624_v17  ;;  %v377_v17 = vld [vmem:[%s2333_s12 + $0x278] sm:$0xff] }
 0x15b   : > { %v756_v19 = vld [vmem:[%s2333_s12 + $0xe50] sm:$0xff]  ;;  %1264 = vmatpush.msrb.mxu2 %v688_v18  ;;  %v441_v18 = vld [vmem:[%s2333_s12 + $0x478] sm:$0xff] }
 0x15c   : > { %v556_v23 = vld [vmem:[%s2333_s12 + $0x810] sm:$0xff]  ;;  %1283 = vmatpush.msrb.mxu3 %v756_v19  ;;  %v509_v19 = vld [vmem:[%s2333_s12 + $0x698] sm:$0xff] }
 0x15d   : > { %v620_v24 = vld [vmem:[%s2333_s12 + $0xa10] sm:$0xff]  ;;  %1225 = vmatpush.msrb.mxu0 %v556_v23  ;;  %v309_v23 = vld [vmem:[%s2333_s12 + $0x58] sm:$0xff] }
 0x15e   : > { %v684_v25 = vld [vmem:[%s2333_s12 + $0xc10] sm:$0xff]  ;;  %1245 = vmatpush.msrb.mxu1 %v620_v24  ;;  %1226 = vmatmul.f32.vlgmr.msrb.gmra.mxu0 %v2779_v3  ;;  %v373_v24 = vld [vmem:[%s2333_s12 + $0x258] sm:$0xff] }
 0x15f   : > { %v752_v26 = vld [vmem:[%s2333_s12 + $0xe30] sm:$0xff]  ;;  %1265 = vmatpush.msrb.mxu2 %v684_v25  ;;  %1290 = vmatpush.msra.mxu0 %v361_v60  ;;  %v437_v25 = vld [vmem:[%s2333_s12 + $0x458] sm:$0xff] }
 0x160   : > { %1284 = vmatpush.msrb.mxu3 %v752_v26  ;;  %v748_v30 = vld [vmem:[%s2333_s12 + $0xe10] sm:$0xff]  ;;  %1310 = vmatpush.msra.mxu1 %v425_v28  ;;  %v505_v26 = vld [vmem:[%s2333_s12 + $0x678] sm:$0xff] }
 0x161   : > { %v2773_v1 = vld [vmem:[#allocation2 + $0x30] sm:$0xff]  ;;  %1330 = vmatpush.msra.mxu2 %v489_v29  ;;  %1291 = vmatpush.msra.mxu0 %v357_v31  ;;  %v305_v60 = vld [vmem:[%s2333_s12 + $0x38] sm:$0xff] }
 0x162   : > { %1266 = vmatmul.f32.vlgmr.msrb.gmra.mxu2 %v2773_v1  ;;  %1285 = vmatpush.msrb.mxu3 %v748_v30  ;;  %v369_v28 = vld [vmem:[%s2333_s12 + $0x238] sm:$0xff] }
 0x163   : > { %1286 = vmatmul.f32.vlgmr.msrb.gmra.mxu3 %v2783_v34  ;;  %1311 = vmatpush.msra.mxu1 %v421_v2  ;;  %v433_v29 = vld [vmem:[%s2333_s12 + $0x438] sm:$0xff] }
 0x164   : > { %1331 = vmatpush.msra.mxu2 %v485_v32  ;;  %1350 = vmatpush.msra.mxu3 %v553_v33  ;;  %v501_v30 = vld [vmem:[%s2333_s12 + $0x658] sm:$0xff] }
 0x165   : > { %1246 = vmatmul.f32.vlgmr.msrb.gmra.mxu1 %v2790_v39  ;;  %1292 = vmatpush.msra.mxu0 %v353_v35  ;;  %v301_v31 = vld [vmem:[%s2333_s12 + $0x18] sm:$0xff] }
 0x166   : > { %1312 = vmatpush.msra.mxu1 %v417_v36  ;;  %1332 = vmatpush.msra.mxu2 %v481_v37  ;;  %v365_v2 = vld [vmem:[%s2333_s12 + $0x218] sm:$0xff] }
 0x167   : > { %1351 = vmatpush.msra.mxu3 %v549_v38  ;;  %1293 = vmatpush.msra.mxu0 %v349_v16  ;;  %v429_v32 = vld [vmem:[%s2333_s12 + $0x418] sm:$0xff] }
 0x168   : > { %1313 = vmatpush.msra.mxu1 %v413_v40  ;;  %1333 = vmatpush.msra.mxu2 %v477_v41  ;;  %v497_v33 = vld [vmem:[%s2333_s12 + $0x638] sm:$0xff] }
 0x169   : > { %1352 = vmatpush.msra.mxu3 %v545_v42  ;;  %1294 = vmatpush.msra.mxu0 %v345_v21  ;;  %v617_v35 = vld [vmem:[%s2333_s12 + $0x9f8] sm:$0xff] }
 0x16a   : > { %1314 = vmatpush.msra.mxu1 %v409_v43  ;;  %1334 = vmatpush.msra.mxu2 %v473_v22  ;;  %v681_v36 = vld [vmem:[%s2333_s12 + $0xbf8] sm:$0xff] }
 0x16b   : > { %1353 = vmatpush.msra.mxu3 %v541_v44  ;;  %1295 = vmatpush.msra.mxu0 %v341_v45  ;;  %v745_v37 = vld [vmem:[%s2333_s12 + $0xdf8] sm:$0xff] }
 0x16c   : > { %1315 = vmatpush.msra.mxu1 %v405_v46  ;;  %1335 = vmatpush.msra.mxu2 %v469_v47  ;;  %v493_v38 = vld [vmem:[%s2333_s12 + $0x618] sm:$0xff] }
 0x16d   : > { %1354 = vmatpush.msra.mxu3 %v537_v27  ;;  %1296 = vmatpush.msra.mxu0 %v337_v48  ;;  %v613_v16 = vld [vmem:[%s2333_s12 + $0x9d8] sm:$0xff] }
 0x16e   : > { %1316 = vmatpush.msra.mxu1 %v401_v49  ;;  %1336 = vmatpush.msra.mxu2 %v465_v50  ;;  %v677_v40 = vld [vmem:[%s2333_s12 + $0xbd8] sm:$0xff] }
 0x16f   : > { %1355 = vmatpush.msra.mxu3 %v533_v51  ;;  %1297 = vmatpush.msra.mxu0 %v333_v52  ;;  %v741_v41 = vld [vmem:[%s2333_s12 + $0xdd8] sm:$0xff] }
 0x170   : > { %1317 = vmatpush.msra.mxu1 %v397_v53  ;;  %1337 = vmatpush.msra.mxu2 %v461_v54  ;;  %v809_v42 = vld [vmem:[%s2333_s12 + $0xff8] sm:$0xff] }
 0x171   : > { %1356 = vmatpush.msra.mxu3 %v529_v55  ;;  %1298 = vmatpush.msra.mxu0 %v329_v56  ;;  %v609_v21 = vld [vmem:[%s2333_s12 + $0x9b8] sm:$0xff] }
 0x172   : > { %1318 = vmatpush.msra.mxu1 %v393_v57  ;;  %1338 = vmatpush.msra.mxu2 %v457_v58  ;;  %v673_v43 = vld [vmem:[%s2333_s12 + $0xbb8] sm:$0xff] }
 0x173   : > { %1357 = vmatpush.msra.mxu3 %v525_v59  ;;  %1299 = vmatpush.msra.mxu0 %v325_v61  ;;  %v737_v22 = vld [vmem:[%s2333_s12 + $0xdb8] sm:$0xff]  ;;  %v2873_v61 = vpop.f32.mrf.mxu1 }
 0x174   : > { %1319 = vmatpush.msra.mxu1 %v389_v62  ;;  %1339 = vmatpush.msra.mxu2 %v453_v63  ;;  %v805_v44 = vld [vmem:[%s2333_s12 + $0xfd8] sm:$0xff] }
 0x175   : > { %1358 = vmatpush.msra.mxu3 %v521_v0  ;;  %1300 = vmatpush.msra.mxu0 %v321_v4  ;;  %v605_v45 = vld [vmem:[%s2333_s12 + $0x998] sm:$0xff] }
 0x176   : > { %1320 = vmatpush.msra.mxu1 %v385_v5  ;;  %1340 = vmatpush.msra.mxu2 %v449_v6  ;;  %v669_v46 = vld [vmem:[%s2333_s12 + $0xb98] sm:$0xff]  ;;  %v2879_v5 = vpop.f32.mrf.mxu0 }
 0x177   : > { %1359 = vmatpush.msra.mxu3 %v517_v7  ;;  %1301 = vmatpush.msra.mxu0 %v317_v9  ;;  %v733_v47 = vld [vmem:[%s2333_s12 + $0xd98] sm:$0xff] }
 0x178   : > { %1321 = vmatpush.msra.mxu1 %v381_v10  ;;  %1341 = vmatpush.msra.mxu2 %v445_v11  ;;  %v801_v27 = vld [vmem:[%s2333_s12 + $0xfb8] sm:$0xff]  ;;  %v2885_v11 = vpop.f32.mrf.mxu2 }
 0x179   : > { %1360 = vmatpush.msra.mxu3 %v513_v13  ;;  %1302 = vmatpush.msra.mxu0 %v313_v15  ;;  %v601_v48 = vld [vmem:[%s2333_s12 + $0x978] sm:$0xff] }
 0x17a   : > { %1322 = vmatpush.msra.mxu1 %v377_v17  ;;  %1342 = vmatpush.msra.mxu2 %v441_v18  ;;  %v665_v49 = vld [vmem:[%s2333_s12 + $0xb78] sm:$0xff] }
 0x17b   : > { %1361 = vmatpush.msra.mxu3 %v509_v19  ;;  %1303 = vmatpush.msra.mxu0 %v309_v23  ;;  %v729_v50 = vld [vmem:[%s2333_s12 + $0xd78] sm:$0xff] }
 0x17c   : > { %1323 = vmatpush.msra.mxu1 %v373_v24  ;;  %1343 = vmatpush.msra.mxu2 %v437_v25  ;;  %v797_v51 = vld [vmem:[%s2333_s12 + $0xf98] sm:$0xff] }
 0x17d   : > { %1362 = vmatpush.msra.mxu3 %v505_v26  ;;  %1304 = vmatpush.msra.mxu0 %v305_v60  ;;  %v597_v52 = vld [vmem:[%s2333_s12 + $0x958] sm:$0xff]  ;;  %v2895_v26 = vpop.f32.mrf.mxu3 }
 0x17e   : > { %1324 = vmatpush.msra.mxu1 %v369_v28  ;;  %1344 = vmatpush.msra.mxu2 %v433_v29  ;;  %v661_v53 = vld [vmem:[%s2333_s12 + $0xb58] sm:$0xff] }
 0x17f   : > { %1363 = vmatpush.msra.mxu3 %v501_v30  ;;  %1305 = vmatpush.msra.mxu0 %v301_v31  ;;  %v725_v54 = vld [vmem:[%s2333_s12 + $0xd58] sm:$0xff]  ;;  %v2900_v30 = vpop.f32.mrf.mxu1 }
 0x180   : > { %1325 = vmatpush.msra.mxu1 %v365_v2  ;;  %1345 = vmatpush.msra.mxu2 %v429_v32  ;;  %v793_v55 = vld [vmem:[%s2333_s12 + $0xf78] sm:$0xff]  ;;  %v2905_v32 = vpop.f32.mrf.mxu0 }
 0x181   : > { %1364 = vmatpush.msra.mxu3 %v497_v33  ;;  %1370 = vmatpush.msrb.mxu0 %v617_v35  ;;  %v593_v56 = vld [vmem:[%s2333_s12 + $0x938] sm:$0xff] }
 0x182   : > { %1390 = vmatpush.msrb.mxu1 %v681_v36  ;;  %1410 = vmatpush.msrb.mxu2 %v745_v37  ;;  %v657_v57 = vld [vmem:[%s2333_s12 + $0xb38] sm:$0xff]  ;;  %v2911_v37 = vpop.f32.mrf.mxu2 }
 0x183   : > { %1365 = vmatpush.msra.mxu3 %v493_v38  ;;  %1371 = vmatpush.msrb.mxu0 %v613_v16  ;;  %v721_v58 = vld [vmem:[%s2333_s12 + $0xd38] sm:$0xff] }
 0x184   : > { %1391 = vmatpush.msrb.mxu1 %v677_v40  ;;  %1411 = vmatpush.msrb.mxu2 %v741_v41  ;;  %v789_v59 = vld [vmem:[%s2333_s12 + $0xf58] sm:$0xff] }
 0x185   : > { %1430 = vmatpush.msrb.mxu3 %v809_v42  ;;  %1372 = vmatpush.msrb.mxu0 %v609_v21  ;;  %v589_v62 = vld [vmem:[%s2333_s12 + $0x918] sm:$0xff]  ;;  %v2923_v21 = vpop.f32.mrf.mxu3 }
 0x186   : > { %1392 = vmatpush.msrb.mxu1 %v673_v43  ;;  %1412 = vmatpush.msrb.mxu2 %v737_v22  ;;  %v653_v63 = vld [vmem:[%s2333_s12 + $0xb18] sm:$0xff] }
 0x187   : > { %1431 = vmatpush.msrb.mxu3 %v805_v44  ;;  %1373 = vmatpush.msrb.mxu0 %v605_v45  ;;  %v717_v0 = vld [vmem:[%s2333_s12 + $0xd18] sm:$0xff]  ;;  %v1007_v44 = vpop.f32.mrf.mxu1 }
 0x188   : > { %1393 = vmatpush.msrb.mxu1 %v669_v46  ;;  %1413 = vmatpush.msrb.mxu2 %v733_v47  ;;  %v785_v4 = vld [vmem:[%s2333_s12 + $0xf38] sm:$0xff]  ;;  %v848_v46 = vadd.f32 %v2873_v61, %v2879_v5  ;;  %v987_v47 = vpop.f32.mrf.mxu0  ;;  %v1917_v5 = vld [vmem:[%s2339_s25 + $0x360] sm:$0xff] }
 0x189   : > { %1432 = vmatpush.msrb.mxu3 %v801_v27  ;;  %1374 = vmatpush.msrb.mxu0 %v601_v48  ;;  %v585_v6 = vld [vmem:[%s2333_s12 + $0x8f8] sm:$0xff] }
 0x18a   : > { %1394 = vmatpush.msrb.mxu1 %v665_v49  ;;  %1414 = vmatpush.msrb.mxu2 %v729_v50  ;;  %v649_v7 = vld [vmem:[%s2333_s12 + $0xaf8] sm:$0xff]  ;;  %v1008_v49 = vadd.f32 %v1007_v44, %v987_v47  ;;  %v1891_v44 = vld [vmem:[%s2339_s25 + $0x290] sm:$0xff] }
 0x18b   : > { %1433 = vmatpush.msrb.mxu3 %v797_v51  ;;  %1375 = vmatpush.msrb.mxu0 %v597_v52  ;;  %v713_v9 = vld [vmem:[%s2333_s12 + $0xcf8] sm:$0xff]  ;;  %v1027_v51 = vpop.f32.mrf.mxu2  ;;  %v1887_v52 = vld [vmem:[%s2339_s25 + $0x270] sm:$0xff] }
 0x18c   : > { %1395 = vmatpush.msrb.mxu1 %v661_v53  ;;  %1415 = vmatpush.msrb.mxu2 %v725_v54  ;;  %v781_v10 = vld [vmem:[%s2333_s12 + $0xf18] sm:$0xff]  ;;  %v868_v53 = vadd.f32 %v2885_v11, %v848_v46  ;;  %v1903_v54 = vld [vmem:[%s2339_s25 + $0x2f0] sm:$0xff]  ;;  %v1890_v46 = vld [vmem:[%s2339_s25 + $0x288] sm:$0xff] }
 0x18d   : > { %1434 = vmatpush.msrb.mxu3 %v793_v55  ;;  %1376 = vmatpush.msrb.mxu0 %v593_v56  ;;  %v581_v13 = vld [vmem:[%s2333_s12 + $0x8d8] sm:$0xff]  ;;  %v1886_v56 = vld [vmem:[%s2339_s25 + $0x268] sm:$0xff]  ;;  %v1907_v47 = vld [vmem:[%s2339_s25 + $0x310] sm:$0xff] }
 0x18e   : > { %1396 = vmatpush.msrb.mxu1 %v657_v57  ;;  %1416 = vmatpush.msrb.mxu2 %v721_v58  ;;  %v645_v15 = vld [vmem:[%s2333_s12 + $0xad8] sm:$0xff]  ;;  %v1028_v57 = vadd.f32 %v1027_v51, %v1008_v49  ;;  %v1919_v58 = vld [vmem:[%s2339_s25 + $0x370] sm:$0xff]  ;;  %v888_v61 = vadd.f32 %v2895_v26, %v868_v53 }
 0x18f   : > { %1435 = vmatpush.msrb.mxu3 %v789_v59  ;;  %1377 = vmatpush.msrb.mxu0 %v589_v62  ;;  %v709_v17 = vld [vmem:[%s2333_s12 + $0xcd8] sm:$0xff]  ;;  %v1885_v59 = vld [vmem:[%s2339_s25 + $0x260] sm:$0xff]  ;;  %v1918_v62 = vld [vmem:[%s2339_s25 + $0x368] sm:$0xff] }
 0x190   : > { %1397 = vmatpush.msrb.mxu1 %v653_v63  ;;  %1417 = vmatpush.msrb.mxu2 %v717_v0  ;;  %v777_v18 = vld [vmem:[%s2333_s12 + $0xef8] sm:$0xff] }
 0x191   : > { %1436 = vmatpush.msrb.mxu3 %v785_v4  ;;  %1378 = vmatpush.msrb.mxu0 %v585_v6  ;;  %v577_v19 = vld [vmem:[%s2333_s12 + $0x8b8] sm:$0xff]  ;;  %v1067_v4 = vpop.f32.mrf.mxu0  ;;  %v1883_v6 = vld [vmem:[%s2339_s25 + $0x250] sm:$0xff] }
 0x192   : > { %1398 = vmatpush.msrb.mxu1 %v649_v7  ;;  %1418 = vmatpush.msrb.mxu2 %v713_v9  ;;  %v641_v23 = vld [vmem:[%s2333_s12 + $0xab8] sm:$0xff]  ;;  %v908_v7 = vadd.f32 %v2905_v32, %v888_v61  ;;  %v1899_v9 = vld [vmem:[%s2339_s25 + $0x2d0] sm:$0xff]  ;;  %v1482_v61 = vld [vmem:[%s2339_s25 + $0xe0] sm:$0xff] }
 0x193   : > { %1437 = vmatpush.msrb.mxu3 %v781_v10  ;;  %1379 = vmatpush.msrb.mxu0 %v581_v13  ;;  %v705_v24 = vld [vmem:[%s2333_s12 + $0xcb8] sm:$0xff]  ;;  %v1882_v13 = vld [vmem:[%s2339_s25 + $0x248] sm:$0xff]  ;;  %v1895_v32 = vld [vmem:[%s2339_s25 + $0x2b0] sm:$0xff] }
 0x194   : > { %1399 = vmatpush.msrb.mxu1 %v645_v15  ;;  %v773_v25 = vld [vmem:[%s2333_s12 + $0xed8] sm:$0xff]  ;;  %1419 = vmatpush.msrb.mxu2 %v709_v17  ;;  %v1087_v15 = vpop.f32.mrf.mxu1  ;;  %v1898_v17 = vld [vmem:[%s2339_s25 + $0x2c8] sm:$0xff] }
 0x195   : > { %1438 = vmatpush.msrb.mxu3 %v777_v18  ;;  %v573_v60 = vld [vmem:[%s2333_s12 + $0x898] sm:$0xff]  ;;  %1380 = vmatpush.msrb.mxu0 %v577_v19  ;;  %v1915_v18 = vld [vmem:[%s2339_s25 + $0x350] sm:$0xff]  ;;  %v1881_v19 = vld [vmem:[%s2339_s25 + $0x240] sm:$0xff] }
 0x196   : > { %1400 = vmatpush.msrb.mxu1 %v641_v23  ;;  %v637_v28 = vld [vmem:[%s2333_s12 + $0xa98] sm:$0xff]  ;;  %1420 = vmatpush.msrb.mxu2 %v705_v24  ;;  %v928_v23 = vadd.f32 %v2900_v30, %v908_v7  ;;  %v1897_v24 = vld [vmem:[%s2339_s25 + $0x2c0] sm:$0xff]  ;;  %v1479_v7 = vld [vmem:[%s2339_s25 + $0xc8] sm:$0xff] }
 0x197   : > { %v701_v29 = vld [vmem:[%s2333_s12 + $0xc98] sm:$0xff]  ;;  %1439 = vmatpush.msrb.mxu3 %v773_v25  ;;  %1346 = vmatmul.f32.vlgmr.msra.gmra.mxu2 %v2745_v8  ;;  %v1914_v25 = vld [vmem:[%s2339_s25 + $0x348] sm:$0xff] }
 0x198   : > { %v769_v31 = vld [vmem:[%s2333_s12 + $0xeb8] sm:$0xff]  ;;  %1381 = vmatpush.msrb.mxu0 %v573_v60  ;;  %1401 = vmatpush.msrb.mxu1 %v637_v28  ;;  %v1107_v28 = vpop.f32.mrf.mxu2  ;;  %v948_v30 = vadd.f32 %v2911_v37, %v928_v23  ;;  %v1494_v23 = vld [vmem:[%s2339_s25 + $0x140] sm:$0xff] }
 0x199   : > { %v569_v2 = vld [vmem:[%s2333_s12 + $0x878] sm:$0xff]  ;;  %1421 = vmatpush.msrb.mxu2 %v701_v29  ;;  %1440 = vmatpush.msrb.mxu3 %v769_v31  ;;  %v1913_v31 = vld [vmem:[%s2339_s25 + $0x340] sm:$0xff] }
 0x19a   : > { %v633_v33 = vld [vmem:[%s2333_s12 + $0xa78] sm:$0xff]  ;;  %1306 = vmatmul.f32.vlgmr.msra.gmra.mxu0 %v2751_v12  ;;  %1366 = vmatmul.f32.vlgmr.msra.gmra.mxu3 %v2755_v14  ;;  %v2975_v37 = vadd.f32 %v2923_v21, %v948_v30  ;;  %v1875_v21 = vld [vmem:[%s2339_s25 + $0x210] sm:$0xff] }
 0x19b   : > { %v697_v35 = vld [vmem:[%s2333_s12 + $0xc78] sm:$0xff]  ;;  %1382 = vmatpush.msrb.mxu0 %v569_v2  ;;  %1402 = vmatpush.msrb.mxu1 %v633_v33  ;;  %v1879_v2 = vld [vmem:[%s2339_s25 + $0x230] sm:$0xff] }
 0x19c   : > { %v765_v36 = vld [vmem:[%s2333_s12 + $0xe98] sm:$0xff]  ;;  %1422 = vmatpush.msrb.mxu2 %v697_v35  ;;  %1326 = vmatmul.f32.vlgmr.msra.gmra.mxu1 %v2762_v20  ;;  %2030 = vtanh.f32 %v2975_v37  ;;  %v1935_v30 = vld [vmem:[%s2339_s25 + $0x3f0] sm:$0xff] }
 0x19d   : > { %v565_v8 = vld [vmem:[%s2333_s12 + $0x858] sm:$0xff]  ;;  %1441 = vmatpush.msrb.mxu3 %v765_v36  ;;  %v1878_v36 = vld [vmem:[%s2339_s25 + $0x228] sm:$0xff] }
 0x19e   : > { %v629_v38 = vld [vmem:[%s2333_s12 + $0xa58] sm:$0xff]  ;;  %1383 = vmatpush.msrb.mxu0 %v565_v8 }
 0x19f   : > { %v693_v16 = vld [vmem:[%s2333_s12 + $0xc58] sm:$0xff]  ;;  %1403 = vmatpush.msrb.mxu1 %v629_v38  ;;  %v1894_v38 = vld [vmem:[%s2339_s25 + $0x2a8] sm:$0xff] }
 0x1a0   : > { %v761_v40 = vld [vmem:[%s2333_s12 + $0xe78] sm:$0xff]  ;;  %1423 = vmatpush.msrb.mxu2 %v693_v16  ;;  %v1911_v16 = vld [vmem:[%s2339_s25 + $0x330] sm:$0xff] }
 0x1a1   : > { %v561_v12 = vld [vmem:[%s2333_s12 + $0x838] sm:$0xff]  ;;  %1442 = vmatpush.msrb.mxu3 %v761_v40  ;;  %v1877_v40 = vld [vmem:[%s2339_s25 + $0x220] sm:$0xff] }
 0x1a2   : > { %v625_v41 = vld [vmem:[%s2333_s12 + $0xa38] sm:$0xff]  ;;  %1384 = vmatpush.msrb.mxu0 %v561_v12  ;;  %v1893_v12 = vld [vmem:[%s2339_s25 + $0x2a0] sm:$0xff] }
 0x1a3   : > { %v689_v42 = vld [vmem:[%s2333_s12 + $0xc38] sm:$0xff]  ;;  %1404 = vmatpush.msrb.mxu1 %v625_v41  ;;  %v1910_v41 = vld [vmem:[%s2339_s25 + $0x328] sm:$0xff] }
 0x1a4   : > { %v757_v14 = vld [vmem:[%s2333_s12 + $0xe58] sm:$0xff]  ;;  %1424 = vmatpush.msrb.mxu2 %v689_v42 }
 0x1a5   : > { %v557_v43 = vld [vmem:[%s2333_s12 + $0x818] sm:$0xff]  ;;  %1443 = vmatpush.msrb.mxu3 %v757_v14 }
 0x1a6   : > { %v621_v22 = vld [vmem:[%s2333_s12 + $0xa18] sm:$0xff]  ;;  %1385 = vmatpush.msrb.mxu0 %v557_v43 }
 0x1a7   : > { %v685_v20 = vld [vmem:[%s2333_s12 + $0xc18] sm:$0xff]  ;;  %1405 = vmatpush.msrb.mxu1 %v621_v22  ;;  %1386 = vmatmul.f32.vlgmr.msrb.gmra.mxu0 %v2779_v3  ;;  %v1047_v3 = vpop.f32.mrf.mxu3  ;;  %v1909_v22 = vld [vmem:[%s2339_s25 + $0x320] sm:$0xff] }
 0x1a8   : > { %v753_v45 = vld [vmem:[%s2333_s12 + $0xe38] sm:$0xff]  ;;  %1425 = vmatpush.msrb.mxu2 %v685_v20  ;;  %1406 = vmatmul.f32.vlgmr.msrb.gmra.mxu1 %v2790_v39  ;;  %v1901_v39 = vld [vmem:[%s2339_s25 + $0x2e0] sm:$0xff]  ;;  %v1048_v63 = vadd.f32 %v1047_v3, %v1028_v57  ;;  %v1467_v57 = vld [vmem:[%s2339_s25 + $0x68] sm:$0xff] }
 0x1a9   : > { %v1888_v27 = vld [vmem:[%s2339_s25 + $0x278] sm:$0xff]  ;;  %1444 = vmatpush.msrb.mxu3 %v753_v45  ;;  %1426 = vmatmul.f32.vlgmr.msrb.gmra.mxu2 %v2773_v1  ;;  %v1902_v1 = vld [vmem:[%s2339_s25 + $0x2e8] sm:$0xff] }
 0x1aa   : > { %v1904_v48 = vld [vmem:[%s2339_s25 + $0x2f8] sm:$0xff]  ;;  %1587 = vmatpush.msra.mxu0 %v1888_v27  ;;  %v1068_v11 = vadd.f32 %v1067_v4, %v1048_v63  ;;  %v1874_v45 = vld [vmem:[%s2339_s25 + $0x208] sm:$0xff]  ;;  %v1873_v27 = vld [vmem:[%s2339_s25 + $0x200] sm:$0xff] }
 0x1ab   : > { %v749_v50 = vld [vmem:[%s2333_s12 + $0xe18] sm:$0xff]  ;;  %1607 = vmatpush.msra.mxu1 %v1904_v48  ;;  %v1889_v48 = vld [vmem:[%s2339_s25 + $0x280] sm:$0xff]  ;;  %v1483_v3 = vld [vmem:[%s2339_s25 + $0xe8] sm:$0xff] }
 0x1ac   : > { %v1920_v55 = vld [vmem:[%s2339_s25 + $0x378] sm:$0xff]  ;;  %1445 = vmatpush.msrb.mxu3 %v749_v50  ;;  %1588 = vmatpush.msra.mxu0 %v1887_v52  ;;  %v1088_v26 = vadd.f32 %v1087_v15, %v1068_v11  ;;  %v2031_v50 = vpop.eup %2030  ;;  %v1906_v52 = vld [vmem:[%s2339_s25 + $0x308] sm:$0xff]  ;;  %v1480_v4 = vld [vmem:[%s2339_s25 + $0xd0] sm:$0xff] }
 0x1ad   : > { %1446 = vmatmul.f32.vlgmr.msrb.gmra.mxu3 %v2783_v34  ;;  %1608 = vmatpush.msra.mxu1 %v1903_v54  ;;  %v1884_v34 = vld [vmem:[%s2339_s25 + $0x258] sm:$0xff]  ;;  %v1468_v54 = vld [vmem:[%s2339_s25 + $0x70] sm:$0xff]  ;;  %v1478_v11 = vld [vmem:[%s2339_s25 + $0xc0] sm:$0xff] }
 0x1ae   : > { %1627 = vmatpush.msra.mxu2 %v1920_v55  ;;  %1589 = vmatpush.msra.mxu0 %v1886_v56  ;;  %v1900_v0 = vld [vmem:[%s2339_s25 + $0x2d8] sm:$0xff]  ;;  %v1108_v35 = vadd.f32 %v1107_v28, %v1088_v26  ;;  %v1484_v55 = vld [vmem:[%s2339_s25 + $0xf0] sm:$0xff]  ;;  %v1905_v56 = vld [vmem:[%s2339_s25 + $0x300] sm:$0xff] }
 0x1af   : > { %1609 = vmatpush.msra.mxu1 %v1902_v1  ;;  %v1916_v10 = vld [vmem:[%s2339_s25 + $0x358] sm:$0xff]  ;;  %v1127_v8 = vpop.f32.mrf.mxu3  ;;  %v1459_v26 = vld [vmem:[%s2339_s25 + $0x28] sm:$0xff] }
 0x1b0   : > { %1628 = vmatpush.msra.mxu2 %v1919_v58  ;;  %1590 = vmatpush.msra.mxu0 %v1885_v59  ;;  %v1880_v60 = vld [vmem:[%s2339_s25 + $0x238] sm:$0xff]  ;;  %v2979_v42 = vadd.f32 %v1127_v8, %v1108_v35  ;;  %v1466_v58 = vld [vmem:[%s2339_s25 + $0x60] sm:$0xff]  ;;  %v1500_v59 = vld [vmem:[%s2339_s25 + $0x170] sm:$0xff] }
 0x1b1   : > { %1610 = vmatpush.msra.mxu1 %v1901_v39  ;;  %v1896_v29 = vld [vmem:[%s2339_s25 + $0x2b8] sm:$0xff]  ;;  %v1475_v28 = vld [vmem:[%s2339_s25 + $0xa8] sm:$0xff] }
 0x1b2   : > { %1629 = vmatpush.msra.mxu2 %v1918_v62  ;;  %1591 = vmatpush.msra.mxu0 %v1884_v34  ;;  %v1912_v33 = vld [vmem:[%s2339_s25 + $0x338] sm:$0xff]  ;;  %2032 = vtanh.f32 %v2979_v42  ;;  %v1499_v62 = vld [vmem:[%s2339_s25 + $0x168] sm:$0xff]  ;;  %v1464_v34 = vld [vmem:[%s2339_s25 + $0x50] sm:$0xff] }
 0x1b3   : > { %1611 = vmatpush.msra.mxu1 %v1900_v0  ;;  %v1876_v14 = vld [vmem:[%s2339_s25 + $0x218] sm:$0xff]  ;;  %v1498_v0 = vld [vmem:[%s2339_s25 + $0x160] sm:$0xff] }
 0x1b4   : > { %1630 = vmatpush.msra.mxu2 %v1917_v5  ;;  %1592 = vmatpush.msra.mxu0 %v1883_v6  ;;  %v1892_v43 = vld [vmem:[%s2339_s25 + $0x298] sm:$0xff]  ;;  %v1463_v5 = vld [vmem:[%s2339_s25 + $0x48] sm:$0xff] }
 0x1b5   : > { %1612 = vmatpush.msra.mxu1 %v1899_v9  ;;  %v1908_v20 = vld [vmem:[%s2339_s25 + $0x318] sm:$0xff]  ;;  %v1462_v9 = vld [vmem:[%s2339_s25 + $0x40] sm:$0xff] }
 0x1b6   : > { %1631 = vmatpush.msra.mxu2 %v1916_v10  ;;  %1593 = vmatpush.msra.mxu0 %v1882_v13  ;;  %v1469_v49 = vld [vmem:[%s2339_s25 + $0x78] sm:$0xff]  ;;  %v1496_v10 = vld [vmem:[%s2339_s25 + $0x150] sm:$0xff] }
 0x1b7   : > { %1613 = vmatpush.msra.mxu1 %v1898_v17  ;;  %v1485_v51 = vld [vmem:[%s2339_s25 + $0xf8] sm:$0xff]  ;;  %v1495_v17 = vld [vmem:[%s2339_s25 + $0x148] sm:$0xff] }
 0x1b8   : > { %1632 = vmatpush.msra.mxu2 %v1915_v18  ;;  %1594 = vmatpush.msra.mxu0 %v1881_v19  ;;  %v2033_v53 = vpop.eup %2032  ;;  %v1501_v1 = vld [vmem:[%s2339_s25 + $0x178] sm:$0xff]  ;;  %v1460_v19 = vld [vmem:[%s2339_s25 + $0x30] sm:$0xff] }
 0x1b9   : > { %1614 = vmatpush.msra.mxu1 %v1897_v24  ;;  %v1465_v39 = vld [vmem:[%s2339_s25 + $0x58] sm:$0xff]  ;;  %v1476_v24 = vld [vmem:[%s2339_s25 + $0xb0] sm:$0xff] }
 0x1ba   : > { %1633 = vmatpush.msra.mxu2 %v1914_v25  ;;  %1595 = vmatpush.msra.mxu0 %v1880_v60  ;;  %v1481_v63 = vld [vmem:[%s2339_s25 + $0xd8] sm:$0xff]  ;;  %v1147_v25 = vpop.f32.mrf.mxu0 }
 0x1bb   : > { %1615 = vmatpush.msra.mxu1 %v1896_v29  ;;  %v1497_v6 = vld [vmem:[%s2339_s25 + $0x158] sm:$0xff]  ;;  %v1458_v29 = vld [vmem:[%s2339_s25 + $0x20] sm:$0xff] }
 0x1bc   : > { %1634 = vmatpush.msra.mxu2 %v1913_v31  ;;  %1596 = vmatpush.msra.mxu0 %v1879_v2  ;;  %v1936_v13 = vld [vmem:[%s2339_s25 + $0x3f8] sm:$0xff]  ;;  %v1167_v31 = vpop.f32.mrf.mxu1  ;;  %v1492_v2 = vld [vmem:[%s2339_s25 + $0x130] sm:$0xff] }
 0x1bd   : > { %1616 = vmatpush.msra.mxu1 %v1895_v32  ;;  %v1461_v15 = vld [vmem:[%s2339_s25 + $0x38] sm:$0xff]  ;;  %1647 = vmatpush.msra.mxu3 %v1936_v13  ;;  %v1474_v32 = vld [vmem:[%s2339_s25 + $0xa0] sm:$0xff] }
 0x1be   : > { %1635 = vmatpush.msra.mxu2 %v1912_v33  ;;  %1597 = vmatpush.msra.mxu0 %v1878_v36  ;;  %v1477_v18 = vld [vmem:[%s2339_s25 + $0xb8] sm:$0xff]  ;;  %v1168_v33 = vadd.f32 %v1167_v31, %v1147_v25  ;;  %v1934_v36 = vld [vmem:[%s2339_s25 + $0x3e8] sm:$0xff]  ;;  %v1514_v13 = vld [vmem:[%s2339_s25 + $0x1e0] sm:$0xff] }
 0x1bf   : > { %1617 = vmatpush.msra.mxu1 %v1894_v38  ;;  %v1493_v60 = vld [vmem:[%s2339_s25 + $0x138] sm:$0xff]  ;;  %v1491_v38 = vld [vmem:[%s2339_s25 + $0x128] sm:$0xff]  ;;  %1648 = vmatpush.msra.mxu3 %v1935_v30  ;;  %v1502_v30 = vld [vmem:[%s2339_s25 + $0x180] sm:$0xff] }
 0x1c0   : > { %1636 = vmatpush.msra.mxu2 %v1911_v16  ;;  %1598 = vmatpush.msra.mxu0 %v1877_v40  ;;  %v1457_v8 = vld [vmem:[%s2339_s25 + $0x18] sm:$0xff]  ;;  %v1507_v25 = vld [vmem:[%s2339_s25 + $0x1a8] sm:$0xff] }
 0x1c1   : > { %1618 = vmatpush.msra.mxu1 %v1893_v12  ;;  %v1473_v16 = vld [vmem:[%s2339_s25 + $0x98] sm:$0xff]  ;;  %v1933_v12 = vld [vmem:[%s2339_s25 + $0x3e0] sm:$0xff]  ;;  %1649 = vmatpush.msra.mxu3 %v1934_v36  ;;  %v1503_v31 = vld [vmem:[%s2339_s25 + $0x188] sm:$0xff] }
 0x1c2   : > { %1637 = vmatpush.msra.mxu2 %v1910_v41  ;;  %1599 = vmatpush.msra.mxu0 %v1876_v14  ;;  %v1456_v41 = vld [vmem:[%s2339_s25 + $0x10] sm:$0xff]  ;;  %v1207_v14 = vpop.f32.mrf.mxu3 }
 0x1c3   : > { %1619 = vmatpush.msra.mxu1 %v1892_v43  ;;  %v1490_v43 = vld [vmem:[%s2339_s25 + $0x120] sm:$0xff]  ;;  %1650 = vmatpush.msra.mxu3 %v1933_v12 }
 0x1c4   : > { %1638 = vmatpush.msra.mxu2 %v1909_v22  ;;  %1600 = vmatpush.msra.mxu0 %v1875_v21  ;;  %v1472_v22 = vld [vmem:[%s2339_s25 + $0x90] sm:$0xff] }
 0x1c5   : > { %1620 = vmatpush.msra.mxu1 %v1891_v44  ;;  %v1932_v44 = vld [vmem:[%s2339_s25 + $0x3d8] sm:$0xff] }
 0x1c6   : > { %1639 = vmatpush.msra.mxu2 %v1908_v20  ;;  %1601 = vmatpush.msra.mxu0 %v1874_v45  ;;  %v1455_v20 = vld [vmem:[%s2339_s25 + $0x8] sm:$0xff]  ;;  %v1489_v45 = vld [vmem:[%s2339_s25 + $0x118] sm:$0xff] }
 0x1c7   : > { %1621 = vmatpush.msra.mxu1 %v1890_v46  ;;  %v1471_v46 = vld [vmem:[%s2339_s25 + $0x88] sm:$0xff]  ;;  %1651 = vmatpush.msra.mxu3 %v1932_v44 }
 0x1c8   : > { %1640 = vmatpush.msra.mxu2 %v1907_v47  ;;  %1602 = vmatpush.msra.mxu0 %v1873_v27  ;;  %v1931_v27 = vld [vmem:[%s2339_s25 + $0x3d0] sm:$0xff] }
 0x1c9   : > { %1622 = vmatpush.msra.mxu1 %v1889_v48  ;;  %1603 = vmatmul.f32.vlgmr.msra.gmra.mxu0 %v2031_v50  ;;  %v1454_v48 = vld [vmem:[%s2339_s25] sm:$0xff]  ;;  %v1488_v50 = vld [vmem:[%s2339_s25 + $0x110] sm:$0xff] }
 0x1ca   : > { %1623 = vmatmul.f32.vlgmr.msra.gmra.mxu1 %v2033_v53  ;;  %1668 = vmatpush.msrb.mxu0 %v1469_v49 }
 0x1cb   : > { %1688 = vmatpush.msrb.mxu1 %v1485_v51  ;;  %1641 = vmatpush.msra.mxu2 %v1906_v52  ;;  %v1470_v51 = vld [vmem:[%s2339_s25 + $0x80] sm:$0xff]  ;;  %v1450_v52 = vmax.f32 %v2975_v37, 0.0 }
 0x1cc   : > { %1669 = vmatpush.msrb.mxu0 %v1468_v54  ;;  %v1487_v54 = vld [vmem:[%s2339_s25 + $0x108] sm:$0xff]  ;;  %1652 = vmatpush.msra.mxu3 %v1931_v27 }
 0x1cd   : > { %1689 = vmatpush.msrb.mxu1 %v1484_v55  ;;  %1642 = vmatpush.msra.mxu2 %v1905_v56  ;;  %v1451_v55 = vmax.f32 %v2979_v42, 0.0 }
 0x1ce   : > { %1670 = vmatpush.msrb.mxu0 %v1467_v57 }
 0x1cf   : > { %1708 = vmatpush.msrb.mxu2 %v1501_v1  ;;  %1690 = vmatpush.msrb.mxu1 %v1483_v3  ;;  %v1930_v1 = vld [vmem:[%s2339_s25 + $0x3c8] sm:$0xff]  ;;  %v1486_v3 = vld [vmem:[%s2339_s25 + $0x100] sm:$0xff] }
 0x1d0   : > { %1671 = vmatpush.msrb.mxu0 %v1466_v58  ;;  %v1929_v58 = vld [vmem:[%s2339_s25 + $0x3c0] sm:$0xff]  ;;  %1653 = vmatpush.msra.mxu3 %v1930_v1 }
 0x1d1   : > { %1709 = vmatpush.msrb.mxu2 %v1500_v59  ;;  %1691 = vmatpush.msrb.mxu1 %v1482_v61  ;;  %v1928_v61 = vld [vmem:[%s2339_s25 + $0x3b8] sm:$0xff] }
 0x1d2   : > { %1672 = vmatpush.msrb.mxu0 %v1465_v39  ;;  %1654 = vmatpush.msra.mxu3 %v1929_v58  ;;  %v1927_v39 = vld [vmem:[%s2339_s25 + $0x3b0] sm:$0xff] }
 0x1d3   : > { %1710 = vmatpush.msrb.mxu2 %v1499_v62  ;;  %1692 = vmatpush.msrb.mxu1 %v1481_v63  ;;  %v1926_v62 = vld [vmem:[%s2339_s25 + $0x3a8] sm:$0xff]  ;;  %v1925_v63 = vld [vmem:[%s2339_s25 + $0x3a0] sm:$0xff] }
 0x1d4   : > { %1673 = vmatpush.msrb.mxu0 %v1464_v34  ;;  %1655 = vmatpush.msra.mxu3 %v1928_v61 }
 0x1d5   : > { %1711 = vmatpush.msrb.mxu2 %v1498_v0  ;;  %1693 = vmatpush.msrb.mxu1 %v1480_v4  ;;  %v1924_v0 = vld [vmem:[%s2339_s25 + $0x398] sm:$0xff]  ;;  %v1923_v4 = vld [vmem:[%s2339_s25 + $0x390] sm:$0xff] }
 0x1d6   : > { %1674 = vmatpush.msrb.mxu0 %v1463_v5  ;;  %1656 = vmatpush.msra.mxu3 %v1927_v39 }
 0x1d7   : > { %1712 = vmatpush.msrb.mxu2 %v1497_v6  ;;  %1694 = vmatpush.msrb.mxu1 %v1479_v7  ;;  %v1187_v35 = vpop.f32.mrf.mxu2  ;;  %v1922_v6 = vld [vmem:[%s2339_s25 + $0x388] sm:$0xff]  ;;  %v1921_v7 = vld [vmem:[%s2339_s25 + $0x380] sm:$0xff] }
 0x1d8   : > { %1675 = vmatpush.msrb.mxu0 %v1462_v9  ;;  %v1188_v40 = vadd.f32 %v1187_v35, %v1168_v33  ;;  %1657 = vmatpush.msra.mxu3 %v1926_v62  ;;  %v1517_v9 = vld [vmem:[%s2339_s25 + $0x1f8] sm:$0xff] }
 0x1d9   : > { %1713 = vmatpush.msrb.mxu2 %v1496_v10  ;;  %1695 = vmatpush.msrb.mxu1 %v1478_v11  ;;  %v1516_v10 = vld [vmem:[%s2339_s25 + $0x1f0] sm:$0xff]  ;;  %v1515_v11 = vld [vmem:[%s2339_s25 + $0x1e8] sm:$0xff] }
 0x1da   : > { %1676 = vmatpush.msrb.mxu0 %v1461_v15  ;;  %v1208_v21 = vadd.f32 %v1207_v14, %v1188_v40  ;;  %1658 = vmatpush.msra.mxu3 %v1925_v63  ;;  %v1513_v15 = vld [vmem:[%s2339_s25 + $0x1d8] sm:$0xff] }
 0x1db   : > { %1714 = vmatpush.msrb.mxu2 %v1495_v17  ;;  %1696 = vmatpush.msrb.mxu1 %v1477_v18  ;;  %v1227_v47 = vpop.f32.mrf.mxu0  ;;  %v1512_v17 = vld [vmem:[%s2339_s25 + $0x1d0] sm:$0xff]  ;;  %v1511_v18 = vld [vmem:[%s2339_s25 + $0x1c8] sm:$0xff] }
 0x1dc   : > { %1677 = vmatpush.msrb.mxu0 %v1460_v19  ;;  %v1228_v49 = vadd.f32 %v1227_v47, %v1208_v21  ;;  %1659 = vmatpush.msra.mxu3 %v1924_v0  ;;  %v1510_v19 = vld [vmem:[%s2339_s25 + $0x1c0] sm:$0xff] }
 0x1dd   : > { %1715 = vmatpush.msrb.mxu2 %v1494_v23  ;;  %1697 = vmatpush.msrb.mxu1 %v1476_v24  ;;  %v1509_v23 = vld [vmem:[%s2339_s25 + $0x1b8] sm:$0xff]  ;;  %v1508_v24 = vld [vmem:[%s2339_s25 + $0x1b0] sm:$0xff] }
 0x1de   : > { %1678 = vmatpush.msrb.mxu0 %v1459_v26  ;;  %1660 = vmatpush.msra.mxu3 %v1923_v4  ;;  %v1506_v26 = vld [vmem:[%s2339_s25 + $0x1a0] sm:$0xff] }
 0x1df   : > { %1716 = vmatpush.msrb.mxu2 %v1493_v60  ;;  %1698 = vmatpush.msrb.mxu1 %v1475_v28  ;;  %v1505_v60 = vld [vmem:[%s2339_s25 + $0x198] sm:$0xff]  ;;  %v1504_v28 = vld [vmem:[%s2339_s25 + $0x190] sm:$0xff] }
 0x1e0   : > { %1679 = vmatpush.msrb.mxu0 %v1458_v29  ;;  %1661 = vmatpush.msra.mxu3 %v1922_v6 }
 0x1e1   : > { %1717 = vmatpush.msrb.mxu2 %v1492_v2  ;;  %1699 = vmatpush.msrb.mxu1 %v1474_v32 }
 0x1e2   : > { %1680 = vmatpush.msrb.mxu0 %v1457_v8  ;;  %v1247_v53 = vpop.f32.mrf.mxu1  ;;  %1662 = vmatpush.msra.mxu3 %v1921_v7 }
 0x1e3   : > { %1718 = vmatpush.msrb.mxu2 %v1491_v38  ;;  %1700 = vmatpush.msrb.mxu1 %v1473_v16  ;;  %v1248_v56 = vadd.f32 %v1247_v53, %v1228_v49 }
 0x1e4   : > { %1681 = vmatpush.msrb.mxu0 %v1456_v41  ;;  %1728 = vmatpush.msrb.mxu3 %v1517_v9 }
 0x1e5   : > { %1719 = vmatpush.msrb.mxu2 %v1490_v43  ;;  %1701 = vmatpush.msrb.mxu1 %v1472_v22  ;;  %v1267_v57 = vpop.f32.mrf.mxu2 }
 0x1e6   : > { %1682 = vmatpush.msrb.mxu0 %v1455_v20  ;;  %v1268_v37 = vadd.f32 %v1267_v57, %v1248_v56  ;;  %v1287_v59 = vpop.f32.mrf.mxu3  ;;  %1729 = vmatpush.msrb.mxu3 %v1516_v10  ;;  %v1667_v56 = vld [vmem:[#allocation8] sm:$0xff] }
 0x1e7   : > { %1720 = vmatpush.msrb.mxu2 %v1489_v45  ;;  %1702 = vmatpush.msrb.mxu1 %v1471_v46 }
 0x1e8   : > { %1683 = vmatpush.msrb.mxu0 %v1454_v48  ;;  %v1288_v42 = vadd.f32 %v1287_v59, %v1268_v37  ;;  %1730 = vmatpush.msrb.mxu3 %v1515_v11 }
 0x1e9   : > { %1721 = vmatpush.msrb.mxu2 %v1488_v50  ;;  %1703 = vmatpush.msrb.mxu1 %v1470_v51 }
 0x1ea   : > { %1684 = vmatmul.f32.vlgmr.msrb.gmra.mxu0 %v1450_v52  ;;  %1704 = vmatmul.f32.vlgmr.msrb.gmra.mxu1 %v1451_v55  ;;  %2034 = vtanh.f32 %v1288_v42  ;;  %v1452_v5 = vmax.f32 %v1288_v42, 0.0 }
 0x1eb   : > { %1722 = vmatpush.msrb.mxu2 %v1487_v54  ;;  %1731 = vmatpush.msrb.mxu3 %v1514_v13 }
 0x1ed   : > { %1723 = vmatpush.msrb.mxu2 %v1486_v3  ;;  %1732 = vmatpush.msrb.mxu3 %v1513_v15 }
 0x1ef   : > { %1733 = vmatpush.msrb.mxu3 %v1512_v17 }
 0x1f0   : > { %v2035_v34 = vpop.eup %2034 }
 0x1f1   : > { %1643 = vmatmul.f32.vlgmr.msra.gmra.mxu2 %v2035_v34  ;;  %1734 = vmatpush.msrb.mxu3 %v1511_v18 }
 0x1f3   : > { %1735 = vmatpush.msrb.mxu3 %v1510_v19 }
 0x1f5   : > { %1736 = vmatpush.msrb.mxu3 %v1509_v23 }
 0x1f7   : > { %1737 = vmatpush.msrb.mxu3 %v1508_v24 }
 0x1f9   : > { %1724 = vmatmul.f32.vlgmr.msrb.gmra.mxu2 %v1452_v5  ;;  %1738 = vmatpush.msrb.mxu3 %v1507_v25 }
 0x1fb   : > { %1739 = vmatpush.msrb.mxu3 %v1506_v26 }
 0x1fd   : > { %1740 = vmatpush.msrb.mxu3 %v1505_v60 }
 0x1ff   : > { %1741 = vmatpush.msrb.mxu3 %v1504_v28 }
 0x201   : > { %1742 = vmatpush.msrb.mxu3 %v1503_v31 }
 0x203   : > { %1743 = vmatpush.msrb.mxu3 %v1502_v30 }
 0x217   : > { %v1307_v29 = vpop.f32.mrf.mxu0 }
 0x219   : > { %v1327_v2 = vpop.f32.mrf.mxu1 }
 0x21a   : > { %v1328_v32 = vadd.f32 %v1327_v2, %v1307_v29  ;;  %v1347_v33 = vpop.f32.mrf.mxu2 }
 0x21c   : > { %v1348_v35 = vadd.f32 %v1347_v33, %v1328_v32 }
 0x21d   : > { %v1367_v36 = vpop.f32.mrf.mxu3 }
 0x21e   : > { %v1368_v8 = vadd.f32 %v1367_v36, %v1348_v35 }
 0x224   : > { %v1387_v38 = vpop.f32.mrf.mxu0 }
 0x225   : > { %v1388_v16 = vadd.f32 %v1387_v38, %v1368_v8  ;;  %v1407_v40 = vpop.f32.mrf.mxu1 }
 0x227   : > { %v1408_v12 = vadd.f32 %v1407_v40, %v1388_v16 }
 0x22c   : > { %v1427_v41 = vpop.f32.mrf.mxu2 }
 0x22d   : > { %v1428_v14 = vadd.f32 %v1427_v41, %v1408_v12 }
 0x230   : > { %v1447_v43 = vpop.f32.mrf.mxu3 }
 0x231   : > { %v1448_v22 = vadd.f32 %v1447_v43, %v1428_v14 }
 0x233   : > { %2036 = vtanh.f32 %v1448_v22  ;;  %v1453_v44 = vmax.f32 %v1448_v22, 0.0 }
 0x239   : > { %v2037_v21 = vpop.eup %2036 }
 0x23a   : > { %1663 = vmatmul.f32.vlgmr.msra.gmra.mxu3 %v2037_v21 }
 0x242   : > { %1744 = vmatmul.f32.vlgmr.msrb.gmra.mxu3 %v1453_v44 }
 0x246   : > { %v1604_v20 = vpop.f32.mrf.mxu0 }
 0x247   : > { %v1624_v45 = vpop.f32.mrf.mxu1 }
 0x248   : > { %v1625_v47 = vadd.f32 %v1624_v45, %v1604_v20 }
 0x267   : > { %v1685_v50 = vpop.f32.mrf.mxu0  ;;  %v1705_v52 = vpop.f32.mrf.mxu1 }
 0x274   : > { %v1644_v46 = vpop.f32.mrf.mxu2 }
 0x275   : > { %v1645_v27 = vadd.f32 %v1644_v46, %v1625_v47 }
 0x27c   : > { %v1725_v54 = vpop.f32.mrf.mxu2 }
 0x2bd   : > { %v1664_v48 = vpop.f32.mrf.mxu3 }
 0x2be   : > { %v1665_v49 = vadd.f32 %v1664_v48, %v1645_v27 }
 0x2c0   : > { %v1686_v51 = vadd.f32 %v1685_v50, %v1665_v49 }
 0x2c2   : > { %v1706_v53 = vadd.f32 %v1705_v52, %v1686_v51 }
 0x2c4   : > { %v1726_v55 = vadd.f32 %v1725_v54, %v1706_v53 }
 0x2c5   : > { %v1745_v57 = vpop.f32.mrf.mxu3 }
 0x2c6   : > { %v1746_v1 = vadd.f32 %v1745_v57, %v1726_v55 }
 0x2c8   : > { %v1748_v3 = vadd.f32 %v1746_v1, %v1667_v56 }
 0x2ca   : > { %1749 = vst [vmem:[#allocation8] sm:$0xff] %v1748_v3 }
 0x2cb   : > { %1959 = dma.vmem_to_hbm [thread:$0]  (%p1968_p1), %s1759_s23, 128, %s1761_s11, [#allocation4]  }
 0x2cc   : > { %2165 = dma.done.wait (%p1968_p1), [#allocation4], 128  }
 0x2cd   : > { %2167 = vsyncadd (%p1968_p1), [#allocation4], 4294967168 }
 0x2ce PF: > { %s18_s17 = sadd.s32 1, %s2190_s17   ;;  %s3107_s12 = smov %s2174_s13 }
 0x2cf   : > { %p15_p2 = scmp.ge.s32.totalorder %s18_s17, 4   ;;  %s3108_s13 = smov %s2178_s14 }
 0x2d0   : > { %s3109_s14 = smov %s2279_s24  ;;  %s3110_s15 = smov %s2186_s16 }
 0x2d1   : > { %s3111_s16 = smov %s3113_s19  ;;  %17 = sbr.rel (!%p15_p2) target bundleno = 6 (0x6), region = 97 }
 0x2d6   :  { %1774 = vsyncpa [#allocation3], 1 }
 0x2d7   :  { %1776 = vsyncpa [#allocation3 + $0x1], 1 }
 0x2d8   :  { %1777 = vsyncpa [#allocation6], 1 }
 0x2d9   :  { %1779 = vsyncpa [#allocation6 + $0x1], 1 }
 0x2da   :  { %1780 = vsyncpa [#allocation4], 1 }
 0x2db   :  { %1782 = vsyncpa [#allocation4 + $0x1], 1 }

</bundles_post_ra>
